<compile_context>
chip_gen: v7x
topology: tpu7x:2x2x1
jax: 0.10.0
libtpu: 0.0.40
codegen_flags: <defaults>
</compile_context>

<pallas_src>
import functools
import math

import jax
import jax.numpy as jnp
from jax.experimental import pallas as pl
from jax.experimental.pallas import tpu as pltpu


# ----------------------------- in-kernel helpers ----------------------------

def _layernorm(x, gamma, beta, eps):
    mean = jnp.mean(x, axis=-1, keepdims=True)
    var = jnp.mean((x - mean) ** 2, axis=-1, keepdims=True)
    return (x - mean) * jax.lax.rsqrt(var + eps) * gamma + beta


def _gelu_new(x):
    # tanh approximation, matches ALBERT's default hidden_act ("gelu_new")
    return 0.5 * x * (1.0 + jnp.tanh(0.7978845608028654 * (x + 0.044715 * x * x * x)))


# -------------------- fused kernel: embed + encoder + head -------------------
# grid = (B, num_layers); axis 0 "parallel" (sequences), axis 1 "arbitrary"
# (layer loop with the activation carried in x_sc).

def _fused_albert_kernel(emb_ref,
                         eln_g_ref, eln_b_ref, ep_w_ref, ep_b_ref,
                         qkv_w_ref, qkv_b_ref, ao_w_ref, ao_b_ref,
                         ln1_g_ref, ln1_b_ref, ffn_w_ref, ffn_b_ref,
                         fo_w_ref, fo_b_ref, ln2_g_ref, ln2_b_ref,
                         lin_w_ref, lin_b_ref,
                         o_ref, x_sc,
                         *, nh, dh, eps):
    l = pl.program_id(1)
    n_layers = pl.num_programs(1)
    H = nh * dh

    # ---- first layer step: embedding LayerNorm + E->H projection ----
    @pl.when(l == 0)
    def _():
        e = _layernorm(emb_ref[...].astype(jnp.float32),
                       eln_g_ref[...], eln_b_ref[...], eps)
        x_sc[...] = (jnp.dot(e.astype(ep_w_ref.dtype), ep_w_ref[...],
                             preferred_element_type=jnp.float32) + ep_b_ref[...])

    x = x_sc[...]                                             # (S, H) f32

    # ---- shared ALBERT layer (applied at every grid step along axis 1) ----
    # fused QKV projection: [S, H] @ [H, 3H]  (bf16 operands, f32 accumulation)
    qkv = (jnp.dot(x.astype(qkv_w_ref.dtype), qkv_w_ref[...],
                   preferred_element_type=jnp.float32) + qkv_b_ref[...])
    q = qkv[:, :H].astype(jnp.bfloat16)
    k = qkv[:, H:2 * H].astype(jnp.bfloat16)
    v = qkv[:, 2 * H:].astype(jnp.bfloat16)

    scale = 1.0 / math.sqrt(dh)
    ctx_heads = []
    # TODO(synk): at real nh/dh batch the heads through one batched dot_general
    # ([nh, S, dh] layout); at dh=8 the required reshapes/transposes cost more
    # than these unrolled tiny matmuls and risk Mosaic relayout limitations.
    for h in range(nh):  # nh small & static -> unrolled 2-D matmuls
        qh = q[:, h * dh:(h + 1) * dh]
        kh = k[:, h * dh:(h + 1) * dh]
        vh = v[:, h * dh:(h + 1) * dh]
        s = jax.lax.dot_general(qh, kh, (((1,), (1,)), ((), ())),
                                preferred_element_type=jnp.float32) * scale
        m = jnp.max(s, axis=-1, keepdims=True)
        p = jnp.exp(s - m)                                    # unnormalized, f32
        inv_l = pl.reciprocal(jnp.sum(p, axis=-1, keepdims=True), approx=True)
        ctx_h = jnp.dot(p.astype(jnp.bfloat16), vh,
                        preferred_element_type=jnp.float32)
        ctx_heads.append(ctx_h * inv_l)                       # deferred normalize
    ctx = jnp.concatenate(ctx_heads, axis=1)                  # (S, H)

    attn_out = (jnp.dot(ctx.astype(ao_w_ref.dtype), ao_w_ref[...],
                        preferred_element_type=jnp.float32) + ao_b_ref[...])
    x = _layernorm(attn_out + x, ln1_g_ref[...], ln1_b_ref[...], eps)

    h1 = (jnp.dot(x.astype(ffn_w_ref.dtype), ffn_w_ref[...],
                  preferred_element_type=jnp.float32) + ffn_b_ref[...])
    h1 = _gelu_new(h1)
    h2 = (jnp.dot(h1.astype(fo_w_ref.dtype), fo_w_ref[...],
                  preferred_element_type=jnp.float32) + fo_b_ref[...])
    x = _layernorm(h2 + x, ln2_g_ref[...], ln2_b_ref[...], eps)

    # carry for the next layer (skip the store on the last layer)
    @pl.when(l < n_layers - 1)
    def _():
        x_sc[...] = x

    # ---- last layer step: vocab head + log_softmax (lane-dense [S, 128]) ----
    @pl.when(l == n_layers - 1)
    def _():
        logits = (jnp.dot(x.astype(lin_w_ref.dtype), lin_w_ref[...],
                          preferred_element_type=jnp.float32) + lin_b_ref[...])
        zmax = jnp.max(logits, axis=-1, keepdims=True)
        z = logits - zmax
        lse = jnp.log(jnp.sum(jnp.exp(z), axis=-1, keepdims=True))
        o_ref[...] = (z - lse).astype(o_ref.dtype)


def fused_albert_forward_call(emb, params, *, B, S, nh, num_layers, eps=1e-12):
    E = emb.shape[-1]
    H = params["qkv_w"].shape[0]
    I = params["ffn_w"].shape[1]
    V = params["lin_w"].shape[1]
    dh = H // nh

    kern = functools.partial(_fused_albert_kernel, nh=nh, dh=dh, eps=eps)

    def wspec(shape):
        return pl.BlockSpec(shape, lambda b, l: (0,) * len(shape))

    grid_spec = pltpu.PrefetchScalarGridSpec(
        num_scalar_prefetch=0,
        grid=(B, num_layers),
        in_specs=[
            # per-sequence embedding block (only consumed at l == 0)
            pl.BlockSpec((None, S, E), lambda b, l: (b, 0, 0)),
            wspec((1, E)), wspec((1, E)),                   # embedding LN
            wspec((E, H)), wspec((1, H)),                   # E -> H projection
            wspec((H, 3 * H)), wspec((1, 3 * H)),           # fused QKV
            wspec((H, H)), wspec((1, H)),                   # attn output proj
            wspec((1, H)), wspec((1, H)),                   # LN1
            wspec((H, I)), wspec((1, I)),                   # FFN in
            wspec((I, H)), wspec((1, H)),                   # FFN out
            wspec((1, H)), wspec((1, H)),                   # LN2
            wspec((H, V)), wspec((1, V)),                   # vocab head
        ],
        out_specs=pl.BlockSpec((None, S, V), lambda b, l: (b, 0, 0)),
        scratch_shapes=[pltpu.VMEM((S, H), jnp.float32)],   # per-sequence carry
    )
    return pl.pallas_call(
        kern,
        out_shape=jax.ShapeDtypeStruct((B, S, V), jnp.float32),
        grid_spec=grid_spec,
        compiler_params=pltpu.CompilerParams(
            dimension_semantics=("parallel", "arbitrary")),
    )(emb,
      params["emb_ln_g"].reshape(1, E), params["emb_ln_b"].reshape(1, E),
      params["emb_proj_w"], params["emb_proj_b"].reshape(1, H),
      params["qkv_w"], params["qkv_b"].reshape(1, 3 * H),
      params["attn_out_w"], params["attn_out_b"].reshape(1, H),
      params["attn_ln_g"].reshape(1, H), params["attn_ln_b"].reshape(1, H),
      params["ffn_w"], params["ffn_b"].reshape(1, I),
      params["ffn_out_w"], params["ffn_out_b"].reshape(1, H),
      params["ffn_ln_g"].reshape(1, H), params["ffn_ln_b"].reshape(1, H),
      params["lin_w"], params["lin_b"].reshape(1, V))


# ----------------------------- model definition ----------------------------

CFG = dict(
    V=128,          # vocab_size (small for the synthetic run; 16000 in the module default)
    E=16,           # ALBERT embedding_size
    H=32,           # d_model / hidden_size
    I=64,           # intermediate (FFN) size
    num_heads=4,
    num_layers=2,   # ALBERT shares one layer's weights across all layers
    max_pos=16,
)


def init_params(key, cfg):
    def nrm(k, shape, dtype=jnp.float32):
        return (jax.random.normal(k, shape, dtype=jnp.float32) * 0.02).astype(dtype)

    keys = jax.random.split(key, 16)
    E, H, I, V = cfg["E"], cfg["H"], cfg["I"], cfg["V"]
    wdt = jnp.bfloat16   # MXU operand dtype (f32 accumulation inside kernels)
    p = {
        "word_emb": nrm(keys[0], (V, E)),
        "pos_emb": nrm(keys[1], (cfg["max_pos"], E)),
        "tok_emb": nrm(keys[2], (2, E)),
        "emb_ln_g": jnp.ones((E,), jnp.float32),
        "emb_ln_b": jnp.zeros((E,), jnp.float32),
        "emb_proj_w": nrm(keys[3], (E, H), wdt),
        "emb_proj_b": jnp.zeros((H,), jnp.float32),
        # shared transformer layer (ALBERT weight sharing); Q/K/V fused to [H, 3H]
        "qkv_w": jnp.concatenate([nrm(keys[4], (H, H), wdt),
                                  nrm(keys[5], (H, H), wdt),
                                  nrm(keys[6], (H, H), wdt)], axis=1),
        "qkv_b": jnp.zeros((3 * H,), jnp.float32),
        "attn_out_w": nrm(keys[7], (H, H), wdt),
        "attn_out_b": jnp.zeros((H,), jnp.float32),
        "attn_ln_g": jnp.ones((H,), jnp.float32),
        "attn_ln_b": jnp.zeros((H,), jnp.float32),
        "ffn_w": nrm(keys[8], (H, I), wdt),
        "ffn_b": jnp.zeros((I,), jnp.float32),
        "ffn_out_w": nrm(keys[9], (I, H), wdt),
        "ffn_out_b": jnp.zeros((H,), jnp.float32),
        "ffn_ln_g": jnp.ones((H,), jnp.float32),
        "ffn_ln_b": jnp.zeros((H,), jnp.float32),
        # myAlbertModel head: nn.Linear(d_model, vocab_size)
        "lin_w": nrm(keys[10], (H, V), wdt),
        "lin_b": jnp.zeros((V,), jnp.float32),
    }
    return p


def my_albert_forward(params, input_ids, cfg):
    B, S = input_ids.shape
    nh = cfg["num_heads"]

    # --- ALBERT embeddings: gathers are glue; everything else is the fused kernel ---
    # TODO(synk): token_type_ids hard-coded to 0 and no padding attention_mask
    # (matches the synthetic run / default forward(src)).
    emb = (params["word_emb"][input_ids]
           + params["pos_emb"][:S][None, :, :]
           + params["tok_emb"][0][None, None, :])           # [B, S, E]

    # --- one pallas_call: embed LN + proj, shared layer x num_layers, head ---
    return fused_albert_forward_call(emb, params, B=B, S=S, nh=nh,
                                     num_layers=cfg["num_layers"])   # [B, S, V]


# ----------------------------------- main -----------------------------------

if __name__ == "__main__":
    key = jax.random.PRNGKey(0)
    kp, kx = jax.random.split(key)

    params = init_params(kp, CFG)

    B, S = 2, 8
    src = jax.random.randint(kx, (B, S), 0, CFG["V"], dtype=jnp.int32)  # token ids

    fwd = jax.jit(functools.partial(my_albert_forward, cfg=CFG))
    out = fwd(params, src)
    out = jax.block_until_ready(out)

    assert out.shape == (B, S, CFG["V"])
    # log_softmax rows should sum (in prob space) to ~1
    probs_sum = jnp.exp(out).sum(-1)
    assert bool(jnp.all(jnp.abs(probs_sum - 1.0) < 1e-3))

    print("KERNEL_OK")
</pallas_src>

<mosaic_0001>
module attributes {stable_mosaic.version = 11 : i64} {
  func.func @_fused_albert_kernel(%arg0: i32, %arg1: i32, %arg2: memref<1x8x16xf32, #tpu.memory_space<vmem>>, %arg3: memref<1x16xf32, #tpu.memory_space<vmem>>, %arg4: memref<1x16xf32, #tpu.memory_space<vmem>>, %arg5: memref<16x32xbf16, #tpu.memory_space<vmem>>, %arg6: memref<1x32xf32, #tpu.memory_space<vmem>>, %arg7: memref<32x96xbf16, #tpu.memory_space<vmem>>, %arg8: memref<1x96xf32, #tpu.memory_space<vmem>>, %arg9: memref<32x32xbf16, #tpu.memory_space<vmem>>, %arg10: memref<1x32xf32, #tpu.memory_space<vmem>>, %arg11: memref<1x32xf32, #tpu.memory_space<vmem>>, %arg12: memref<1x32xf32, #tpu.memory_space<vmem>>, %arg13: memref<32x64xbf16, #tpu.memory_space<vmem>>, %arg14: memref<1x64xf32, #tpu.memory_space<vmem>>, %arg15: memref<64x32xbf16, #tpu.memory_space<vmem>>, %arg16: memref<1x32xf32, #tpu.memory_space<vmem>>, %arg17: memref<1x32xf32, #tpu.memory_space<vmem>>, %arg18: memref<1x32xf32, #tpu.memory_space<vmem>>, %arg19: memref<32x128xbf16, #tpu.memory_space<vmem>>, %arg20: memref<1x128xf32, #tpu.memory_space<vmem>>, %arg21: memref<1x8x128xf32, #tpu.memory_space<vmem>>, %arg22: memref<8x32xf32, #tpu.memory_space<vmem>>) attributes {dimension_semantics = [#tpu.dimension_semantics<parallel>, #tpu.dimension_semantics<arbitrary>], iteration_bounds = array<i64: 2, 2>, scalar_prefetch = 0 : i64, scratch_operands = 1 : i64, tpu.core_type = #tpu.core_type<tc>, window_params = [{transform_indices = @transform_0, window_bounds = array<i64: 1, 8, 16>}, {pipeline_mode = #tpu.pipeline_mode<synchronous>, transform_indices = @transform_1, window_bounds = array<i64: 1, 16>}, {pipeline_mode = #tpu.pipeline_mode<synchronous>, transform_indices = @transform_2, window_bounds = array<i64: 1, 16>}, {pipeline_mode = #tpu.pipeline_mode<synchronous>, transform_indices = @transform_3, window_bounds = array<i64: 16, 32>}, {pipeline_mode = #tpu.pipeline_mode<synchronous>, transform_indices = @transform_4, window_bounds = array<i64: 1, 32>}, {pipeline_mode = #tpu.pipeline_mode<synchronous>, transform_indices = @transform_5, window_bounds = array<i64: 32, 96>}, {pipeline_mode = #tpu.pipeline_mode<synchronous>, transform_indices = @transform_6, window_bounds = array<i64: 1, 96>}, {pipeline_mode = #tpu.pipeline_mode<synchronous>, transform_indices = @transform_7, window_bounds = array<i64: 32, 32>}, {pipeline_mode = #tpu.pipeline_mode<synchronous>, transform_indices = @transform_8, window_bounds = array<i64: 1, 32>}, {pipeline_mode = #tpu.pipeline_mode<synchronous>, transform_indices = @transform_9, window_bounds = array<i64: 1, 32>}, {pipeline_mode = #tpu.pipeline_mode<synchronous>, transform_indices = @transform_10, window_bounds = array<i64: 1, 32>}, {pipeline_mode = #tpu.pipeline_mode<synchronous>, transform_indices = @transform_11, window_bounds = array<i64: 32, 64>}, {pipeline_mode = #tpu.pipeline_mode<synchronous>, transform_indices = @transform_12, window_bounds = array<i64: 1, 64>}, {pipeline_mode = #tpu.pipeline_mode<synchronous>, transform_indices = @transform_13, window_bounds = array<i64: 64, 32>}, {pipeline_mode = #tpu.pipeline_mode<synchronous>, transform_indices = @transform_14, window_bounds = array<i64: 1, 32>}, {pipeline_mode = #tpu.pipeline_mode<synchronous>, transform_indices = @transform_15, window_bounds = array<i64: 1, 32>}, {pipeline_mode = #tpu.pipeline_mode<synchronous>, transform_indices = @transform_16, window_bounds = array<i64: 1, 32>}, {pipeline_mode = #tpu.pipeline_mode<synchronous>, transform_indices = @transform_17, window_bounds = array<i64: 32, 128>}, {pipeline_mode = #tpu.pipeline_mode<synchronous>, transform_indices = @transform_18, window_bounds = array<i64: 1, 128>}, {transform_indices = @transform_19, window_bounds = array<i64: 1, 8, 128>}]} {
    %c0_i32 = arith.constant 0 : i32
    %0 = arith.cmpi eq, %arg1, %c0_i32 : i32
    %1 = arith.extui %0 : i1 to i32
    %c0_i32_0 = arith.constant 0 : i32
    %2 = arith.cmpi ne, %1, %c0_i32_0 : i32
    scf.if %2 {
      %c0_66 = arith.constant 0 : index
      %c0_67 = arith.constant 0 : index
      %c0_68 = arith.constant 0 : index
      %176 = vector.load %arg2[%c0_66, %c0_67, %c0_68] : memref<1x8x16xf32, #tpu.memory_space<vmem>>, vector<1x8x16xf32>
      %177 = vector.shape_cast %176 : vector<1x8x16xf32> to vector<8x16xf32>
      %c0_69 = arith.constant 0 : index
      %c0_70 = arith.constant 0 : index
      %178 = vector.load %arg3[%c0_69, %c0_70] : memref<1x16xf32, #tpu.memory_space<vmem>>, vector<1x16xf32>
      %c0_71 = arith.constant 0 : index
      %c0_72 = arith.constant 0 : index
      %179 = vector.load %arg4[%c0_71, %c0_72] : memref<1x16xf32, #tpu.memory_space<vmem>>, vector<1x16xf32>
      %cst_73 = arith.constant dense<0.000000e+00> : vector<8xf32>
      %180 = vector.multi_reduction <add>, %177, %cst_73 [1] : vector<8x16xf32> to vector<8xf32>
      %181 = vector.shape_cast %180 : vector<8xf32> to vector<8x1xf32>
      %cst_74 = arith.constant 1.600000e+01 : f32
      %182 = vector.broadcast %cst_74 : f32 to vector<8x1xf32>
      %183 = arith.divf %181, %182 : vector<8x1xf32>
      %184 = vector.broadcast %183 : vector<8x1xf32> to vector<8x16xf32>
      %185 = arith.subf %177, %184 : vector<8x16xf32>
      %186 = arith.mulf %185, %185 : vector<8x16xf32>
      %cst_75 = arith.constant dense<0.000000e+00> : vector<8xf32>
      %187 = vector.multi_reduction <add>, %186, %cst_75 [1] : vector<8x16xf32> to vector<8xf32>
      %188 = vector.shape_cast %187 : vector<8xf32> to vector<8x1xf32>
      %cst_76 = arith.constant 1.600000e+01 : f32
      %189 = vector.broadcast %cst_76 : f32 to vector<8x1xf32>
      %190 = arith.divf %188, %189 : vector<8x1xf32>
      %191 = vector.broadcast %183 : vector<8x1xf32> to vector<8x16xf32>
      %192 = arith.subf %177, %191 : vector<8x16xf32>
      %cst_77 = arith.constant 9.99999996E-13 : f32
      %193 = vector.broadcast %cst_77 : f32 to vector<8x1xf32>
      %194 = arith.addf %190, %193 : vector<8x1xf32>
      %195 = math.rsqrt %194 : vector<8x1xf32>
      %196 = vector.broadcast %195 : vector<8x1xf32> to vector<8x16xf32>
      %197 = arith.mulf %192, %196 : vector<8x16xf32>
      %198 = vector.broadcast %178 : vector<1x16xf32> to vector<8x16xf32>
      %199 = arith.mulf %197, %198 : vector<8x16xf32>
      %200 = vector.broadcast %179 : vector<1x16xf32> to vector<8x16xf32>
      %201 = arith.addf %199, %200 : vector<8x16xf32>
      %202 = arith.truncf %201 : vector<8x16xf32> to vector<8x16xbf16>
      %c0_78 = arith.constant 0 : index
      %c0_79 = arith.constant 0 : index
      %203 = vector.load %arg5[%c0_78, %c0_79] : memref<16x32xbf16, #tpu.memory_space<vmem>>, vector<16x32xbf16>
      %cst_80 = arith.constant dense<0.000000e+00> : vector<8x32xf32>
      %204 = tpu.matmul %202, %203, %cst_80 {dimension_numbers = #tpu.dot_dimension_numbers<[1], [0], [0], [1], [0, 0, 1, 1], [], []>} : vector<8x16xbf16>, vector<16x32xbf16>, vector<8x32xf32> -> vector<8x32xf32>
      %c0_81 = arith.constant 0 : index
      %c0_82 = arith.constant 0 : index
      %205 = vector.load %arg6[%c0_81, %c0_82] : memref<1x32xf32, #tpu.memory_space<vmem>>, vector<1x32xf32>
      %206 = vector.broadcast %205 : vector<1x32xf32> to vector<8x32xf32>
      %207 = arith.addf %204, %206 : vector<8x32xf32>
      %c0_83 = arith.constant 0 : index
      %c0_84 = arith.constant 0 : index
      %208 = vector.load %arg22[%c0_83, %c0_84] : memref<8x32xf32, #tpu.memory_space<vmem>>, vector<8x32xf32>
      tpu.vector_store %arg22[%c0_83, %c0_84], %207 {strides = array<i32>} : memref<8x32xf32, #tpu.memory_space<vmem>>, vector<8x32xf32>,
    } else {
    }
    %c0 = arith.constant 0 : index
    %c0_1 = arith.constant 0 : index
    %3 = vector.load %arg22[%c0, %c0_1] : memref<8x32xf32, #tpu.memory_space<vmem>>, vector<8x32xf32>
    %4 = arith.truncf %3 : vector<8x32xf32> to vector<8x32xbf16>
    %c0_2 = arith.constant 0 : index
    %c0_3 = arith.constant 0 : index
    %5 = vector.load %arg7[%c0_2, %c0_3] : memref<32x96xbf16, #tpu.memory_space<vmem>>, vector<32x96xbf16>
    %cst = arith.constant dense<0.000000e+00> : vector<8x96xf32>
    %6 = tpu.matmul %4, %5, %cst {dimension_numbers = #tpu.dot_dimension_numbers<[1], [0], [0], [1], [0, 0, 1, 1], [], []>} : vector<8x32xbf16>, vector<32x96xbf16>, vector<8x96xf32> -> vector<8x96xf32>
    %c0_4 = arith.constant 0 : index
    %c0_5 = arith.constant 0 : index
    %7 = vector.load %arg8[%c0_4, %c0_5] : memref<1x96xf32, #tpu.memory_space<vmem>>, vector<1x96xf32>
    %8 = vector.broadcast %7 : vector<1x96xf32> to vector<8x96xf32>
    %9 = arith.addf %6, %8 : vector<8x96xf32>
    %10 = vector.extract_strided_slice %9 {offsets = [0, 0], sizes = [8, 32], strides = [1, 1]} : vector<8x96xf32> to vector<8x32xf32>
    %11 = arith.truncf %10 : vector<8x32xf32> to vector<8x32xbf16>
    %12 = vector.extract_strided_slice %9 {offsets = [0, 32], sizes = [8, 32], strides = [1, 1]} : vector<8x96xf32> to vector<8x32xf32>
    %13 = arith.truncf %12 : vector<8x32xf32> to vector<8x32xbf16>
    %14 = vector.extract_strided_slice %9 {offsets = [0, 64], sizes = [8, 32], strides = [1, 1]} : vector<8x96xf32> to vector<8x32xf32>
    %15 = arith.truncf %14 : vector<8x32xf32> to vector<8x32xbf16>
    %16 = vector.extract_strided_slice %11 {offsets = [0, 0], sizes = [8, 8], strides = [1, 1]} : vector<8x32xbf16> to vector<8x8xbf16>
    %17 = vector.extract_strided_slice %13 {offsets = [0, 0], sizes = [8, 8], strides = [1, 1]} : vector<8x32xbf16> to vector<8x8xbf16>
    %18 = vector.extract_strided_slice %15 {offsets = [0, 0], sizes = [8, 8], strides = [1, 1]} : vector<8x32xbf16> to vector<8x8xbf16>
    %cst_6 = arith.constant dense<0.000000e+00> : vector<8x8xf32>
    %19 = tpu.matmul %16, %17, %cst_6 {dimension_numbers = #tpu.dot_dimension_numbers<[1], [1], [0], [0], [0, 0, 1, 0], [], []>} : vector<8x8xbf16>, vector<8x8xbf16>, vector<8x8xf32> -> vector<8x8xf32>
    %cst_7 = arith.constant 0.353553385 : f32
    %20 = vector.broadcast %cst_7 : f32 to vector<8x8xf32>
    %21 = arith.mulf %19, %20 : vector<8x8xf32>
    %cst_8 = arith.constant dense<0xFF800000> : vector<8xf32>
    %22 = vector.multi_reduction <maximumf>, %21, %cst_8 [1] : vector<8x8xf32> to vector<8xf32>
    %23 = vector.shape_cast %22 : vector<8xf32> to vector<8x1xf32>
    %24 = vector.broadcast %23 : vector<8x1xf32> to vector<8x8xf32>
    %25 = arith.subf %21, %24 : vector<8x8xf32>
    %26 = math.exp %25 : vector<8x8xf32>
    %cst_9 = arith.constant dense<0.000000e+00> : vector<8xf32>
    %27 = vector.multi_reduction <add>, %26, %cst_9 [1] : vector<8x8xf32> to vector<8xf32>
    %28 = vector.shape_cast %27 : vector<8xf32> to vector<8x1xf32>
    %29 = tpu.reciprocal %28 {approx = true} : vector<8x1xf32> -> vector<8x1xf32>
    %30 = arith.truncf %26 : vector<8x8xf32> to vector<8x8xbf16>
    %cst_10 = arith.constant dense<0.000000e+00> : vector<8x8xf32>
    %31 = tpu.matmul %30, %18, %cst_10 {dimension_numbers = #tpu.dot_dimension_numbers<[1], [0], [0], [1], [0, 0, 1, 1], [], []>} : vector<8x8xbf16>, vector<8x8xbf16>, vector<8x8xf32> -> vector<8x8xf32>
    %32 = vector.broadcast %29 : vector<8x1xf32> to vector<8x8xf32>
    %33 = arith.mulf %31, %32 : vector<8x8xf32>
    %34 = vector.extract_strided_slice %11 {offsets = [0, 8], sizes = [8, 8], strides = [1, 1]} : vector<8x32xbf16> to vector<8x8xbf16>
    %35 = vector.extract_strided_slice %13 {offsets = [0, 8], sizes = [8, 8], strides = [1, 1]} : vector<8x32xbf16> to vector<8x8xbf16>
    %36 = vector.extract_strided_slice %15 {offsets = [0, 8], sizes = [8, 8], strides = [1, 1]} : vector<8x32xbf16> to vector<8x8xbf16>
    %cst_11 = arith.constant dense<0.000000e+00> : vector<8x8xf32>
    %37 = tpu.matmul %34, %35, %cst_11 {dimension_numbers = #tpu.dot_dimension_numbers<[1], [1], [0], [0], [0, 0, 1, 0], [], []>} : vector<8x8xbf16>, vector<8x8xbf16>, vector<8x8xf32> -> vector<8x8xf32>
    %cst_12 = arith.constant 0.353553385 : f32
    %38 = vector.broadcast %cst_12 : f32 to vector<8x8xf32>
    %39 = arith.mulf %37, %38 : vector<8x8xf32>
    %cst_13 = arith.constant dense<0xFF800000> : vector<8xf32>
    %40 = vector.multi_reduction <maximumf>, %39, %cst_13 [1] : vector<8x8xf32> to vector<8xf32>
    %41 = vector.shape_cast %40 : vector<8xf32> to vector<8x1xf32>
    %42 = vector.broadcast %41 : vector<8x1xf32> to vector<8x8xf32>
    %43 = arith.subf %39, %42 : vector<8x8xf32>
    %44 = math.exp %43 : vector<8x8xf32>
    %cst_14 = arith.constant dense<0.000000e+00> : vector<8xf32>
    %45 = vector.multi_reduction <add>, %44, %cst_14 [1] : vector<8x8xf32> to vector<8xf32>
    %46 = vector.shape_cast %45 : vector<8xf32> to vector<8x1xf32>
    %47 = tpu.reciprocal %46 {approx = true} : vector<8x1xf32> -> vector<8x1xf32>
    %48 = arith.truncf %44 : vector<8x8xf32> to vector<8x8xbf16>
    %cst_15 = arith.constant dense<0.000000e+00> : vector<8x8xf32>
    %49 = tpu.matmul %48, %36, %cst_15 {dimension_numbers = #tpu.dot_dimension_numbers<[1], [0], [0], [1], [0, 0, 1, 1], [], []>} : vector<8x8xbf16>, vector<8x8xbf16>, vector<8x8xf32> -> vector<8x8xf32>
    %50 = vector.broadcast %47 : vector<8x1xf32> to vector<8x8xf32>
    %51 = arith.mulf %49, %50 : vector<8x8xf32>
    %52 = vector.extract_strided_slice %11 {offsets = [0, 16], sizes = [8, 8], strides = [1, 1]} : vector<8x32xbf16> to vector<8x8xbf16>
    %53 = vector.extract_strided_slice %13 {offsets = [0, 16], sizes = [8, 8], strides = [1, 1]} : vector<8x32xbf16> to vector<8x8xbf16>
    %54 = vector.extract_strided_slice %15 {offsets = [0, 16], sizes = [8, 8], strides = [1, 1]} : vector<8x32xbf16> to vector<8x8xbf16>
    %cst_16 = arith.constant dense<0.000000e+00> : vector<8x8xf32>
    %55 = tpu.matmul %52, %53, %cst_16 {dimension_numbers = #tpu.dot_dimension_numbers<[1], [1], [0], [0], [0, 0, 1, 0], [], []>} : vector<8x8xbf16>, vector<8x8xbf16>, vector<8x8xf32> -> vector<8x8xf32>
    %cst_17 = arith.constant 0.353553385 : f32
    %56 = vector.broadcast %cst_17 : f32 to vector<8x8xf32>
    %57 = arith.mulf %55, %56 : vector<8x8xf32>
    %cst_18 = arith.constant dense<0xFF800000> : vector<8xf32>
    %58 = vector.multi_reduction <maximumf>, %57, %cst_18 [1] : vector<8x8xf32> to vector<8xf32>
    %59 = vector.shape_cast %58 : vector<8xf32> to vector<8x1xf32>
    %60 = vector.broadcast %59 : vector<8x1xf32> to vector<8x8xf32>
    %61 = arith.subf %57, %60 : vector<8x8xf32>
    %62 = math.exp %61 : vector<8x8xf32>
    %cst_19 = arith.constant dense<0.000000e+00> : vector<8xf32>
    %63 = vector.multi_reduction <add>, %62, %cst_19 [1] : vector<8x8xf32> to vector<8xf32>
    %64 = vector.shape_cast %63 : vector<8xf32> to vector<8x1xf32>
    %65 = tpu.reciprocal %64 {approx = true} : vector<8x1xf32> -> vector<8x1xf32>
    %66 = arith.truncf %62 : vector<8x8xf32> to vector<8x8xbf16>
    %cst_20 = arith.constant dense<0.000000e+00> : vector<8x8xf32>
    %67 = tpu.matmul %66, %54, %cst_20 {dimension_numbers = #tpu.dot_dimension_numbers<[1], [0], [0], [1], [0, 0, 1, 1], [], []>} : vector<8x8xbf16>, vector<8x8xbf16>, vector<8x8xf32> -> vector<8x8xf32>
    %68 = vector.broadcast %65 : vector<8x1xf32> to vector<8x8xf32>
    %69 = arith.mulf %67, %68 : vector<8x8xf32>
    %70 = vector.extract_strided_slice %11 {offsets = [0, 24], sizes = [8, 8], strides = [1, 1]} : vector<8x32xbf16> to vector<8x8xbf16>
    %71 = vector.extract_strided_slice %13 {offsets = [0, 24], sizes = [8, 8], strides = [1, 1]} : vector<8x32xbf16> to vector<8x8xbf16>
    %72 = vector.extract_strided_slice %15 {offsets = [0, 24], sizes = [8, 8], strides = [1, 1]} : vector<8x32xbf16> to vector<8x8xbf16>
    %cst_21 = arith.constant dense<0.000000e+00> : vector<8x8xf32>
    %73 = tpu.matmul %70, %71, %cst_21 {dimension_numbers = #tpu.dot_dimension_numbers<[1], [1], [0], [0], [0, 0, 1, 0], [], []>} : vector<8x8xbf16>, vector<8x8xbf16>, vector<8x8xf32> -> vector<8x8xf32>
    %cst_22 = arith.constant 0.353553385 : f32
    %74 = vector.broadcast %cst_22 : f32 to vector<8x8xf32>
    %75 = arith.mulf %73, %74 : vector<8x8xf32>
    %cst_23 = arith.constant dense<0xFF800000> : vector<8xf32>
    %76 = vector.multi_reduction <maximumf>, %75, %cst_23 [1] : vector<8x8xf32> to vector<8xf32>
    %77 = vector.shape_cast %76 : vector<8xf32> to vector<8x1xf32>
    %78 = vector.broadcast %77 : vector<8x1xf32> to vector<8x8xf32>
    %79 = arith.subf %75, %78 : vector<8x8xf32>
    %80 = math.exp %79 : vector<8x8xf32>
    %cst_24 = arith.constant dense<0.000000e+00> : vector<8xf32>
    %81 = vector.multi_reduction <add>, %80, %cst_24 [1] : vector<8x8xf32> to vector<8xf32>
    %82 = vector.shape_cast %81 : vector<8xf32> to vector<8x1xf32>
    %83 = tpu.reciprocal %82 {approx = true} : vector<8x1xf32> -> vector<8x1xf32>
    %84 = arith.truncf %80 : vector<8x8xf32> to vector<8x8xbf16>
    %cst_25 = arith.constant dense<0.000000e+00> : vector<8x8xf32>
    %85 = tpu.matmul %84, %72, %cst_25 {dimension_numbers = #tpu.dot_dimension_numbers<[1], [0], [0], [1], [0, 0, 1, 1], [], []>} : vector<8x8xbf16>, vector<8x8xbf16>, vector<8x8xf32> -> vector<8x8xf32>
    %86 = vector.broadcast %83 : vector<8x1xf32> to vector<8x8xf32>
    %87 = arith.mulf %85, %86 : vector<8x8xf32>
    %88 = tpu.concatenate %33, %51, %69, %87 in 1 : vector<8x8xf32>, vector<8x8xf32>, vector<8x8xf32>, vector<8x8xf32> -> vector<8x32xf32>
    %89 = arith.truncf %88 : vector<8x32xf32> to vector<8x32xbf16>
    %c0_26 = arith.constant 0 : index
    %c0_27 = arith.constant 0 : index
    %90 = vector.load %arg9[%c0_26, %c0_27] : memref<32x32xbf16, #tpu.memory_space<vmem>>, vector<32x32xbf16>
    %cst_28 = arith.constant dense<0.000000e+00> : vector<8x32xf32>
    %91 = tpu.matmul %89, %90, %cst_28 {dimension_numbers = #tpu.dot_dimension_numbers<[1], [0], [0], [1], [0, 0, 1, 1], [], []>} : vector<8x32xbf16>, vector<32x32xbf16>, vector<8x32xf32> -> vector<8x32xf32>
    %c0_29 = arith.constant 0 : index
    %c0_30 = arith.constant 0 : index
    %92 = vector.load %arg10[%c0_29, %c0_30] : memref<1x32xf32, #tpu.memory_space<vmem>>, vector<1x32xf32>
    %93 = vector.broadcast %92 : vector<1x32xf32> to vector<8x32xf32>
    %94 = arith.addf %91, %93 : vector<8x32xf32>
    %95 = arith.addf %94, %3 : vector<8x32xf32>
    %c0_31 = arith.constant 0 : index
    %c0_32 = arith.constant 0 : index
    %96 = vector.load %arg11[%c0_31, %c0_32] : memref<1x32xf32, #tpu.memory_space<vmem>>, vector<1x32xf32>
    %c0_33 = arith.constant 0 : index
    %c0_34 = arith.constant 0 : index
    %97 = vector.load %arg12[%c0_33, %c0_34] : memref<1x32xf32, #tpu.memory_space<vmem>>, vector<1x32xf32>
    %cst_35 = arith.constant dense<0.000000e+00> : vector<8xf32>
    %98 = vector.multi_reduction <add>, %95, %cst_35 [1] : vector<8x32xf32> to vector<8xf32>
    %99 = vector.shape_cast %98 : vector<8xf32> to vector<8x1xf32>
    %cst_36 = arith.constant 3.200000e+01 : f32
    %100 = vector.broadcast %cst_36 : f32 to vector<8x1xf32>
    %101 = arith.divf %99, %100 : vector<8x1xf32>
    %102 = vector.broadcast %101 : vector<8x1xf32> to vector<8x32xf32>
    %103 = arith.subf %95, %102 : vector<8x32xf32>
    %104 = arith.mulf %103, %103 : vector<8x32xf32>
    %cst_37 = arith.constant dense<0.000000e+00> : vector<8xf32>
    %105 = vector.multi_reduction <add>, %104, %cst_37 [1] : vector<8x32xf32> to vector<8xf32>
    %106 = vector.shape_cast %105 : vector<8xf32> to vector<8x1xf32>
    %cst_38 = arith.constant 3.200000e+01 : f32
    %107 = vector.broadcast %cst_38 : f32 to vector<8x1xf32>
    %108 = arith.divf %106, %107 : vector<8x1xf32>
    %109 = vector.broadcast %101 : vector<8x1xf32> to vector<8x32xf32>
    %110 = arith.subf %95, %109 : vector<8x32xf32>
    %cst_39 = arith.constant 9.99999996E-13 : f32
    %111 = vector.broadcast %cst_39 : f32 to vector<8x1xf32>
    %112 = arith.addf %108, %111 : vector<8x1xf32>
    %113 = math.rsqrt %112 : vector<8x1xf32>
    %114 = vector.broadcast %113 : vector<8x1xf32> to vector<8x32xf32>
    %115 = arith.mulf %110, %114 : vector<8x32xf32>
    %116 = vector.broadcast %96 : vector<1x32xf32> to vector<8x32xf32>
    %117 = arith.mulf %115, %116 : vector<8x32xf32>
    %118 = vector.broadcast %97 : vector<1x32xf32> to vector<8x32xf32>
    %119 = arith.addf %117, %118 : vector<8x32xf32>
    %120 = arith.truncf %119 : vector<8x32xf32> to vector<8x32xbf16>
    %c0_40 = arith.constant 0 : index
    %c0_41 = arith.constant 0 : index
    %121 = vector.load %arg13[%c0_40, %c0_41] : memref<32x64xbf16, #tpu.memory_space<vmem>>, vector<32x64xbf16>
    %cst_42 = arith.constant dense<0.000000e+00> : vector<8x64xf32>
    %122 = tpu.matmul %120, %121, %cst_42 {dimension_numbers = #tpu.dot_dimension_numbers<[1], [0], [0], [1], [0, 0, 1, 1], [], []>} : vector<8x32xbf16>, vector<32x64xbf16>, vector<8x64xf32> -> vector<8x64xf32>
    %c0_43 = arith.constant 0 : index
    %c0_44 = arith.constant 0 : index
    %123 = vector.load %arg14[%c0_43, %c0_44] : memref<1x64xf32, #tpu.memory_space<vmem>>, vector<1x64xf32>
    %124 = vector.broadcast %123 : vector<1x64xf32> to vector<8x64xf32>
    %125 = arith.addf %122, %124 : vector<8x64xf32>
    %cst_45 = arith.constant 5.000000e-01 : f32
    %126 = vector.broadcast %cst_45 : f32 to vector<8x64xf32>
    %127 = arith.mulf %126, %125 : vector<8x64xf32>
    %cst_46 = arith.constant 4.471500e-02 : f32
    %128 = vector.broadcast %cst_46 : f32 to vector<8x64xf32>
    %129 = arith.mulf %128, %125 : vector<8x64xf32>
    %130 = arith.mulf %129, %125 : vector<8x64xf32>
    %131 = arith.mulf %130, %125 : vector<8x64xf32>
    %132 = arith.addf %125, %131 : vector<8x64xf32>
    %cst_47 = arith.constant 0.797884583 : f32
    %133 = vector.broadcast %cst_47 : f32 to vector<8x64xf32>
    %134 = arith.mulf %133, %132 : vector<8x64xf32>
    %135 = math.tanh %134 : vector<8x64xf32>
    %cst_48 = arith.constant 1.000000e+00 : f32
    %136 = vector.broadcast %cst_48 : f32 to vector<8x64xf32>
    %137 = arith.addf %136, %135 : vector<8x64xf32>
    %138 = arith.mulf %127, %137 : vector<8x64xf32>
    %139 = arith.truncf %138 : vector<8x64xf32> to vector<8x64xbf16>
    %c0_49 = arith.constant 0 : index
    %c0_50 = arith.constant 0 : index
    %140 = vector.load %arg15[%c0_49, %c0_50] : memref<64x32xbf16, #tpu.memory_space<vmem>>, vector<64x32xbf16>
    %cst_51 = arith.constant dense<0.000000e+00> : vector<8x32xf32>
    %141 = tpu.matmul %139, %140, %cst_51 {dimension_numbers = #tpu.dot_dimension_numbers<[1], [0], [0], [1], [0, 0, 1, 1], [], []>} : vector<8x64xbf16>, vector<64x32xbf16>, vector<8x32xf32> -> vector<8x32xf32>
    %c0_52 = arith.constant 0 : index
    %c0_53 = arith.constant 0 : index
    %142 = vector.load %arg16[%c0_52, %c0_53] : memref<1x32xf32, #tpu.memory_space<vmem>>, vector<1x32xf32>
    %143 = vector.broadcast %142 : vector<1x32xf32> to vector<8x32xf32>
    %144 = arith.addf %141, %143 : vector<8x32xf32>
    %145 = arith.addf %144, %119 : vector<8x32xf32>
    %c0_54 = arith.constant 0 : index
    %c0_55 = arith.constant 0 : index
    %146 = vector.load %arg17[%c0_54, %c0_55] : memref<1x32xf32, #tpu.memory_space<vmem>>, vector<1x32xf32>
    %c0_56 = arith.constant 0 : index
    %c0_57 = arith.constant 0 : index
    %147 = vector.load %arg18[%c0_56, %c0_57] : memref<1x32xf32, #tpu.memory_space<vmem>>, vector<1x32xf32>
    %cst_58 = arith.constant dense<0.000000e+00> : vector<8xf32>
    %148 = vector.multi_reduction <add>, %145, %cst_58 [1] : vector<8x32xf32> to vector<8xf32>
    %149 = vector.shape_cast %148 : vector<8xf32> to vector<8x1xf32>
    %cst_59 = arith.constant 3.200000e+01 : f32
    %150 = vector.broadcast %cst_59 : f32 to vector<8x1xf32>
    %151 = arith.divf %149, %150 : vector<8x1xf32>
    %152 = vector.broadcast %151 : vector<8x1xf32> to vector<8x32xf32>
    %153 = arith.subf %145, %152 : vector<8x32xf32>
    %154 = arith.mulf %153, %153 : vector<8x32xf32>
    %cst_60 = arith.constant dense<0.000000e+00> : vector<8xf32>
    %155 = vector.multi_reduction <add>, %154, %cst_60 [1] : vector<8x32xf32> to vector<8xf32>
    %156 = vector.shape_cast %155 : vector<8xf32> to vector<8x1xf32>
    %cst_61 = arith.constant 3.200000e+01 : f32
    %157 = vector.broadcast %cst_61 : f32 to vector<8x1xf32>
    %158 = arith.divf %156, %157 : vector<8x1xf32>
    %159 = vector.broadcast %151 : vector<8x1xf32> to vector<8x32xf32>
    %160 = arith.subf %145, %159 : vector<8x32xf32>
    %cst_62 = arith.constant 9.99999996E-13 : f32
    %161 = vector.broadcast %cst_62 : f32 to vector<8x1xf32>
    %162 = arith.addf %158, %161 : vector<8x1xf32>
    %163 = math.rsqrt %162 : vector<8x1xf32>
    %164 = vector.broadcast %163 : vector<8x1xf32> to vector<8x32xf32>
    %165 = arith.mulf %160, %164 : vector<8x32xf32>
    %166 = vector.broadcast %146 : vector<1x32xf32> to vector<8x32xf32>
    %167 = arith.mulf %165, %166 : vector<8x32xf32>
    %168 = vector.broadcast %147 : vector<1x32xf32> to vector<8x32xf32>
    %169 = arith.addf %167, %168 : vector<8x32xf32>
    %c1_i32 = arith.constant 1 : i32
    %170 = arith.cmpi slt, %arg1, %c1_i32 : i32
    %171 = arith.extui %170 : i1 to i32
    %c0_i32_63 = arith.constant 0 : i32
    %172 = arith.cmpi ne, %171, %c0_i32_63 : i32
    scf.if %172 {
      %c0_66 = arith.constant 0 : index
      %c0_67 = arith.constant 0 : index
      %176 = vector.load %arg22[%c0_66, %c0_67] : memref<8x32xf32, #tpu.memory_space<vmem>>, vector<8x32xf32>
      tpu.vector_store %arg22[%c0_66, %c0_67], %169 {strides = array<i32>} : memref<8x32xf32, #tpu.memory_space<vmem>>, vector<8x32xf32>,
    } else {
    }
    %c1_i32_64 = arith.constant 1 : i32
    %173 = arith.cmpi eq, %arg1, %c1_i32_64 : i32
    %174 = arith.extui %173 : i1 to i32
    %c0_i32_65 = arith.constant 0 : i32
    %175 = arith.cmpi ne, %174, %c0_i32_65 : i32
    scf.if %175 {
      %176 = arith.truncf %169 : vector<8x32xf32> to vector<8x32xbf16>
      %c0_66 = arith.constant 0 : index
      %c0_67 = arith.constant 0 : index
      %177 = vector.load %arg19[%c0_66, %c0_67] : memref<32x128xbf16, #tpu.memory_space<vmem>>, vector<32x128xbf16>
      %cst_68 = arith.constant dense<0.000000e+00> : vector<8x128xf32>
      %178 = tpu.matmul %176, %177, %cst_68 {dimension_numbers = #tpu.dot_dimension_numbers<[1], [0], [0], [1], [0, 0, 1, 1], [], []>} : vector<8x32xbf16>, vector<32x128xbf16>, vector<8x128xf32> -> vector<8x128xf32>
      %c0_69 = arith.constant 0 : index
      %c0_70 = arith.constant 0 : index
      %179 = vector.load %arg20[%c0_69, %c0_70] : memref<1x128xf32, #tpu.memory_space<vmem>>, vector<1x128xf32>
      %180 = vector.broadcast %179 : vector<1x128xf32> to vector<8x128xf32>
      %181 = arith.addf %178, %180 : vector<8x128xf32>
      %cst_71 = arith.constant dense<0xFF800000> : vector<8xf32>
      %182 = vector.multi_reduction <maximumf>, %181, %cst_71 [1] : vector<8x128xf32> to vector<8xf32>
      %183 = vector.shape_cast %182 : vector<8xf32> to vector<8x1xf32>
      %184 = vector.broadcast %183 : vector<8x1xf32> to vector<8x128xf32>
      %185 = arith.subf %181, %184 : vector<8x128xf32>
      %186 = math.exp %185 : vector<8x128xf32>
      %cst_72 = arith.constant dense<0.000000e+00> : vector<8xf32>
      %187 = vector.multi_reduction <add>, %186, %cst_72 [1] : vector<8x128xf32> to vector<8xf32>
      %188 = vector.shape_cast %187 : vector<8xf32> to vector<8x1xf32>
      %189 = math.log %188 : vector<8x1xf32>
      %190 = vector.broadcast %189 : vector<8x1xf32> to vector<8x128xf32>
      %191 = arith.subf %185, %190 : vector<8x128xf32>
      %c0_73 = arith.constant 0 : index
      %c0_74 = arith.constant 0 : index
      %c0_75 = arith.constant 0 : index
      %192 = vector.load %arg21[%c0_73, %c0_74, %c0_75] : memref<1x8x128xf32, #tpu.memory_space<vmem>>, vector<1x8x128xf32>
      %193 = vector.shape_cast %192 : vector<1x8x128xf32> to vector<8x128xf32>
      %194 = vector.shape_cast %191 : vector<8x128xf32> to vector<1x8x128xf32>
      tpu.vector_store %arg21[%c0_73, %c0_74, %c0_75], %194 {strides = array<i32>} : memref<1x8x128xf32, #tpu.memory_space<vmem>>, vector<1x8x128xf32>,
    } else {
    }
    return
  }
  func.func @transform_0(%arg0: i32, %arg1: i32) -> (i32, i32, i32) {
    %c0_i32 = arith.constant 0 : i32
    %c0_i32_0 = arith.constant 0 : i32
    %c0_i32_1 = arith.constant 0 : i32
    return %arg0, %c0_i32, %c0_i32_0 : i32, i32, i32
  }
  func.func @transform_1(%arg0: i32, %arg1: i32) -> (i32, i32) {
    %c0_i32 = arith.constant 0 : i32
    %c0_i32_0 = arith.constant 0 : i32
    %c0_i32_1 = arith.constant 0 : i32
    return %c0_i32, %c0_i32_0 : i32, i32
  }
  func.func @transform_2(%arg0: i32, %arg1: i32) -> (i32, i32) {
    %c0_i32 = arith.constant 0 : i32
    %c0_i32_0 = arith.constant 0 : i32
    %c0_i32_1 = arith.constant 0 : i32
    return %c0_i32, %c0_i32_0 : i32, i32
  }
  func.func @transform_3(%arg0: i32, %arg1: i32) -> (i32, i32) {
    %c0_i32 = arith.constant 0 : i32
    %c0_i32_0 = arith.constant 0 : i32
    %c0_i32_1 = arith.constant 0 : i32
    return %c0_i32, %c0_i32_0 : i32, i32
  }
  func.func @transform_4(%arg0: i32, %arg1: i32) -> (i32, i32) {
    %c0_i32 = arith.constant 0 : i32
    %c0_i32_0 = arith.constant 0 : i32
    %c0_i32_1 = arith.constant 0 : i32
    return %c0_i32, %c0_i32_0 : i32, i32
  }
  func.func @transform_5(%arg0: i32, %arg1: i32) -> (i32, i32) {
    %c0_i32 = arith.constant 0 : i32
    %c0_i32_0 = arith.constant 0 : i32
    %c0_i32_1 = arith.constant 0 : i32
    return %c0_i32, %c0_i32_0 : i32, i32
  }
  func.func @transform_6(%arg0: i32, %arg1: i32) -> (i32, i32) {
    %c0_i32 = arith.constant 0 : i32
    %c0_i32_0 = arith.constant 0 : i32
    %c0_i32_1 = arith.constant 0 : i32
    return %c0_i32, %c0_i32_0 : i32, i32
  }
  func.func @transform_7(%arg0: i32, %arg1: i32) -> (i32, i32) {
    %c0_i32 = arith.constant 0 : i32
    %c0_i32_0 = arith.constant 0 : i32
    %c0_i32_1 = arith.constant 0 : i32
    return %c0_i32, %c0_i32_0 : i32, i32
  }
  func.func @transform_8(%arg0: i32, %arg1: i32) -> (i32, i32) {
    %c0_i32 = arith.constant 0 : i32
    %c0_i32_0 = arith.constant 0 : i32
    %c0_i32_1 = arith.constant 0 : i32
    return %c0_i32, %c0_i32_0 : i32, i32
  }
  func.func @transform_9(%arg0: i32, %arg1: i32) -> (i32, i32) {
    %c0_i32 = arith.constant 0 : i32
    %c0_i32_0 = arith.constant 0 : i32
    %c0_i32_1 = arith.constant 0 : i32
    return %c0_i32, %c0_i32_0 : i32, i32
  }
  func.func @transform_10(%arg0: i32, %arg1: i32) -> (i32, i32) {
    %c0_i32 = arith.constant 0 : i32
    %c0_i32_0 = arith.constant 0 : i32
    %c0_i32_1 = arith.constant 0 : i32
    return %c0_i32, %c0_i32_0 : i32, i32
  }
  func.func @transform_11(%arg0: i32, %arg1: i32) -> (i32, i32) {
    %c0_i32 = arith.constant 0 : i32
    %c0_i32_0 = arith.constant 0 : i32
    %c0_i32_1 = arith.constant 0 : i32
    return %c0_i32, %c0_i32_0 : i32, i32
  }
  func.func @transform_12(%arg0: i32, %arg1: i32) -> (i32, i32) {
    %c0_i32 = arith.constant 0 : i32
    %c0_i32_0 = arith.constant 0 : i32
    %c0_i32_1 = arith.constant 0 : i32
    return %c0_i32, %c0_i32_0 : i32, i32
  }
  func.func @transform_13(%arg0: i32, %arg1: i32) -> (i32, i32) {
    %c0_i32 = arith.constant 0 : i32
    %c0_i32_0 = arith.constant 0 : i32
    %c0_i32_1 = arith.constant 0 : i32
    return %c0_i32, %c0_i32_0 : i32, i32
  }
  func.func @transform_14(%arg0: i32, %arg1: i32) -> (i32, i32) {
    %c0_i32 = arith.constant 0 : i32
    %c0_i32_0 = arith.constant 0 : i32
    %c0_i32_1 = arith.constant 0 : i32
    return %c0_i32, %c0_i32_0 : i32, i32
  }
  func.func @transform_15(%arg0: i32, %arg1: i32) -> (i32, i32) {
    %c0_i32 = arith.constant 0 : i32
    %c0_i32_0 = arith.constant 0 : i32
    %c0_i32_1 = arith.constant 0 : i32
    return %c0_i32, %c0_i32_0 : i32, i32
  }
  func.func @transform_16(%arg0: i32, %arg1: i32) -> (i32, i32) {
    %c0_i32 = arith.constant 0 : i32
    %c0_i32_0 = arith.constant 0 : i32
    %c0_i32_1 = arith.constant 0 : i32
    return %c0_i32, %c0_i32_0 : i32, i32
  }
  func.func @transform_17(%arg0: i32, %arg1: i32) -> (i32, i32) {
    %c0_i32 = arith.constant 0 : i32
    %c0_i32_0 = arith.constant 0 : i32
    %c0_i32_1 = arith.constant 0 : i32
    return %c0_i32, %c0_i32_0 : i32, i32
  }
  func.func @transform_18(%arg0: i32, %arg1: i32) -> (i32, i32) {
    %c0_i32 = arith.constant 0 : i32
    %c0_i32_0 = arith.constant 0 : i32
    %c0_i32_1 = arith.constant 0 : i32
    return %c0_i32, %c0_i32_0 : i32, i32
  }
  func.func @transform_19(%arg0: i32, %arg1: i32) -> (i32, i32, i32) {
    %c0_i32 = arith.constant 0 : i32
    %c0_i32_0 = arith.constant 0 : i32
    %c0_i32_1 = arith.constant 0 : i32
    return %arg0, %c0_i32, %c0_i32_0 : i32, i32, i32
  }
}

</mosaic_0001>

<bundles_post_ra>
// kernel: my_albert_forward.1
= control target key start
LH: loop header
LB: loop body
LE: loop exit
PB: predicated region body
PF: predicated region fallthrough
CT: control target
= control target key end

     0   :  { %s2547_s0 = inlined_call_operand.vmem [shape: f32[2,8,16], index: 0, kind: input, shape index: {}]   ;;  %s2548_s1 = inlined_call_operand.vmem [shape: f32[1,16], index: 1, kind: input, shape index: {}]   ;;  %s2549_s2 = inlined_call_operand.vmem [shape: f32[1,16], index: 2, kind: input, shape index: {}]   ;;  %s2550_s3 = inlined_call_operand.vmem [shape: bf16[16,32], index: 3, kind: input, shape index: {}]   ;;  %s2551_s4 = inlined_call_operand.vmem [shape: f32[1,32], index: 4, kind: input, shape index: {}]   ;;  %s2552_s5 = inlined_call_operand.vmem [shape: bf16[32,96], index: 5, kind: input, shape index: {}]   ;;  %s2553_s6 = inlined_call_operand.vmem [shape: f32[1,96], index: 6, kind: input, shape index: {}]   ;;  %s2554_s7 = inlined_call_operand.vmem [shape: bf16[32,32], index: 7, kind: input, shape index: {}]   ;;  %s2555_s8 = inlined_call_operand.vmem [shape: f32[1,32], index: 8, kind: input, shape index: {}]   ;;  %s2556_s9 = inlined_call_operand.vmem [shape: f32[1,32], index: 9, kind: input, shape index: {}]   ;;  %s2557_s10 = inlined_call_operand.vmem [shape: f32[1,32], index: 10, kind: input, shape index: {}]   ;;  %s2558_s11 = inlined_call_operand.vmem [shape: bf16[32,64], index: 11, kind: input, shape index: {}]   ;;  %s2559_s12 = inlined_call_operand.vmem [shape: f32[1,64], index: 12, kind: input, shape index: {}]   ;;  %s2560_s13 = inlined_call_operand.vmem [shape: bf16[64,32], index: 13, kind: input, shape index: {}]   ;;  %s2561_s14 = inlined_call_operand.vmem [shape: f32[1,32], index: 14, kind: input, shape index: {}]   ;;  %s2562_s15 = inlined_call_operand.vmem [shape: f32[1,32], index: 15, kind: input, shape index: {}]   ;;  %s2563_s16 = inlined_call_operand.vmem [shape: f32[1,32], index: 16, kind: input, shape index: {}]   ;;  %s2564_s17 = inlined_call_operand.vmem [shape: bf16[32,128], index: 17, kind: input, shape index: {}]   ;;  %s2565_s18 = inlined_call_operand.vmem [shape: f32[1,128], index: 18, kind: input, shape index: {}]   ;;  %s2566_s19 = inlined_call_operand.hbm [shape: f32[2,8,128], index: 19, kind: output, shape index: {}]  }
   0x1   :  { %2576 = sst [smem:[#allocation13_spill]] %s2547_s0 }
   0x2   :  { %2577 = sst [smem:[#allocation14_spill]] %s2548_s1 }
   0x3   :  { %2578 = sst [smem:[#allocation15_spill]] %s2549_s2 }
   0x4   :  { %2579 = sst [smem:[#allocation16_spill]] %s2550_s3 }
   0x5   :  { %2580 = sst [smem:[#allocation17_spill]] %s2551_s4 }
   0x6   :  { %2581 = sst [smem:[#allocation18_spill]] %s2552_s5 }
   0x7   :  { %2582 = sst [smem:[#allocation19_spill]] %s2553_s6 }
   0x8   :  { %2583 = sst [smem:[#allocation20_spill]] %s2566_s19 }
   0x9   :  { %24 = vsyncpa [#allocation4], 0 }
   0xa   :  { %26 = vsyncpa [#allocation4 + $0x1], 0  ;;  %s2234_s0 = smov 0   ;;  %s2236_s30 = smov 0  }
   0xb   :  { %s2238_s20 = smov 0   ;;  %s2240_s21 = smov 0  }
   0xc   :  { %s2242_s1 = smov 0   ;;  %s2244_s22 = smov 0  }
   0xd   :  { %s2246_s2 = smov 0   ;;  %s2248_s23 = smov 0  }
   0xe LB: > { %2584 = sst [smem:[#allocation6_spill]] %s2083_s0  ;;  %s1699_s24 = sadd.s32 4294967295, %s2111_s23   ;;  %s2111_s23 = sphi %s2248_s23, %s32_s23   ;;  %s2107_s2 = sphi %s2246_s2, %s2610_s2   ;;  %s2103_s22 = sphi %s2244_s22, %s2609_s22   ;;  %s2099_s1 = sphi %s2242_s1, %s2608_s1   ;;  %s2095_s21 = sphi %s2240_s21, %s2607_s21   ;;  %s2091_s20 = sphi %s2238_s20, %s2613_s20   ;;  %s2087_s30 = sphi %s2236_s30, %s2612_s30   ;;  %s2083_s0 = sphi %s2234_s0, %s2611_s0  }
   0xf   : > { %2585 = sst [smem:[#allocation7_spill]] %s2103_s22  ;;  %s1700_s25 = sadd.s32 4294967294, %s2111_s23  }
  0x10   : > { %2586 = sst [smem:[#allocation8_spill]] %s2107_s2  ;;  %s41_s3 = sadd.s32 1, %s2103_s22 }
  0x11   : > { %2587 = sst [smem:[#allocation9_spill]] %s2111_s23  ;;  %p42_p0 = scmp.ge.s32.totalorder %s41_s3, 2 }
  0x12   : > { %s44_s26 = sadd.s32 1, %s2107_s2  ;;  %p465_p1 = scmp.ne.s32.totalorder %s2091_s20, %s2087_s30 }
  0x13   : > { %p466_p2 = scmp.eq.s32.totalorder %s1699_s24, 3  ;;  %s2615_s3 = smov (%p42_p0, %s41_s3), 0 }
  0x14   : > { %2588 = sst [smem:[#allocation10_spill]] %s2615_s3  ;;  %s2617_s26 = smov (!%p42_p0, %s44_s26), %s2107_s2 }
  0x15   : > { %p2283_p3 = por %p466_p2, %p465_p1  ;;  %p471_p4 = scmp.ne.s32.totalorder %s2087_s30, %s2083_s0 }
  0x16   : > { %p46_p5 = scmp.ge.s32.totalorder %s2617_s26, 2  ;;  %p472_p6 = scmp.eq.s32.totalorder %s1700_s25, 3 }
  0x17   : > { %p1703_p7 = scmp.ge.s32.totalorder %s2111_s23, 1  ;;  %p551_p8 = scmp.lt.s32.totalorder %s2111_s23, 5 }
  0x18   : > { %s2619_s26 = smov (%p46_p5, %s2617_s26), 0  ;;  %p2293_p9 = por %p472_p6, %p471_p4 }
  0x19   : > { %2590 = sst [smem:[#allocation11_spill]] %s2619_s26  ;;  %p552_p10 = pnand %p1703_p7, %p551_p8 }
  0x1a   : > { %s2591_s28 = scalar_select %p2293_p9, 1, 0 }
  0x1b   : > { %s452_s29 = ssub.s32 %s2107_s2, %s2619_s26  ;;  %s455_s24 = sadd.s32 1, %s2091_s20 }
  0x1c   : > { %2592 = sst [smem:[#allocation12_spill]] %s2591_s28  ;;  %p453_p11 = scmp.eq.s32.totalorder %s452_s29, 0 }
  0x1d   : > { %555 = sbr.rel (%p552_p10) target bundleno = 3550 (0xdde), region = 96  ;;  %s2575_s25 = sand.u32 (!%p552_p10), 1, %s2087_s30  }
  0x1e   : > { %s2301_s3 = scalar_select %p453_p11, %s2091_s20, %s455_s24  }
  0x1f   : > { %p606_p12 = scmp.lt.s32.totalorder (!%p552_p10), %s2099_s1, 1  ;;  %s2307_s22 = sshll.u32 (!%p552_p10), %s2575_s25, 3 }
  0x20   : > { %s2593_s26 = sld [smem:[#allocation13_spill]] (!%p552_p10)  ;;  %p1706_p13 = scmp.ne.s32.totalorder (!%p552_p10), %s2095_s21, 0 }
  0x24   : > { %s607_s0 = scalar_select %p606_p12, %s2099_s1, 1 }
  0x25   : > { %614 = sbr.rel (%p1706_p13) target bundleno = 571 (0x23b), region = 100  ;;  %vm618_vm0 = vcmask (!%p1706_p13), 130048   ;;  %s2594_s19 = sld [smem:[#allocation16_spill]] (!%p1706_p13)  ;;  %v2113_v8 = vmov (!%p1706_p13), 0.0   ;;  %vm2114_vm1 = vmmov (!%p1706_p13), 0   ;;  %vm706_vm2 = vcmask (!%p1706_p13), 261120  }
  0x26   : > { %s1705_s23 = sshll.u32 %s607_s0, 3  ;;  %1787 = vmatprep.subr.bf16.mxu0 (!%p1706_p13), %v2113_v8  ;;  %1789 = vmatprep.mubr.msk.bf16.mxu0 (!%p1706_p13), %vm2114_vm1, %v2113_v8  ;;  %s2596_s29 = sld [smem:[#allocation15_spill]] (!%p1706_p13) }
  0x27   : > { %s609_s2 = scalar_lea.vmem %s2593_s26, %s1705_s23  ;;  %s2595_s26 = sld [smem:[#allocation14_spill]] (!%p1706_p13) }
  0x28   : > { %v615_v0 = vld [vmem:[%s609_s2] sm:$0xff] (!%p1706_p13)  ;;  %s2597_s4 = sld [smem:[#allocation17_spill]] (!%p1706_p13) }
  0x29   : > { %v619_v1 = vsel (!%p1706_p13), %vm618_vm0, %v615_v0, 0.0 }
  0x2a   : > { %620 = vadd.xlane.f32.xlu0 (!%p1706_p13), %v619_v1 }
  0x2b   : > { %v1976_v7 = vld [vmem:[%s2594_s19] sm:$0xff] (!%p1706_p13)  }
  0x2c   : > { %1788 = vmatpush3.bf16.msra.mxu0 %v1976_v7  ;;  %v1708_v15 = vld [vmem:[%s2596_s29] ss:$0 sm:$0xff] }
  0x2d   : > { %v1707_v13 = vld [vmem:[%s2595_s26] ss:$0 sm:$0xff] }
  0x2e   : > { %v1709_v19 = vld [vmem:[%s2597_s4] ss:$0 sm:$0xff] }
  0xb7   : > { %v621_v2 = vpop.xlane.xlu0 %620 }
  0xb8   : > { %v623_v3 = vmul.f32 0.0625, %v621_v2 }
  0xba   : > { %v624_v4 = vsub.f32 %v615_v0, %v623_v3 }
  0xbc   : > { %v625_v5 = vmul.f32 %v624_v4, %v624_v4 }
  0xbe   : > { %v626_v6 = vsel %vm618_vm0, %v625_v5, 0.0 }
  0xbf   : > { %627 = vadd.xlane.f32.xlu0 %v626_v6 }
 0x14c   : > { %v628_v9 = vpop.xlane.xlu0 %627 }
 0x14d   : > { %v629_v10 = vmul.f32 0.0625, %v628_v9 }
 0x14f   : > { %v630_v11 = vadd.f32 1e-12, %v629_v10 }
 0x151   : > { %1977 = vrsqrt.f32 %v630_v11 }
 0x15b   : > { %v1978_v12 = vpop.eup %1977 }
 0x15c   : > { %v632_v14 = vmul.f32 %v1978_v12, %v624_v4 }
 0x15e   : > { %v639_v16 = vmul.f32 %v1707_v13, %v632_v14 }
 0x160   : > { %v646_v17 = vadd.f32 %v1708_v15, %v639_v16 }
 0x162   : > { %v647_v18 = vpack.c.bf16 %v646_v17, %v646_v17 }
 0x164   : > { %1790 = vmatmul.mubr.msk.bf16.vlgmr.msra.gmra.mrb[0].mxu0 %vm618_vm0, %v647_v18 }
 0x237   : > { %v700_v20 = vpop.f32.mrb[0].mxu0 }
 0x238   : > { %v701_v21 = vadd.f32 %v1709_v19, %v700_v20  ;;  %v1791_v22 = vpop.f32.mrb[1].mxu0 }
 0x239   : > { %v703_v23 = vpop.f32.mrb[2].mxu0 }
 0x23a   : > { %707 = vst.msk [vmem:[#allocation2] sm:$0xff] %vm706_vm2, %v701_v21  ;;  %v1792_v24 = vpop.f32.mrb[3].mxu0 }
 0x23b PF: > { %s2598_s5 = sld [smem:[#allocation18_spill]]  ;;  %v2115_v26 = vmov 0.0   ;;  %vm2116_vm3 = vmmov 0   ;;  %vm733_vm4 = vcmask 261120   ;;  %s2599_s6 = sld [smem:[#allocation19_spill]]  ;;  %vm781_vm5 = vcmask 64512  }
 0x23c   : > { %1793 = vmatprep.subr.bf16.mxu0 %v2115_v26  ;;  %1801 = vmatprep.subr.bf16.mxu1 %v2115_v26  ;;  %s2117_s28 = smov 120   ;;  %s2118_s0 = smov 96   ;;  %vm845_vm6 = vcmask 1043456   ;;  %vm1236_vm7 = vcmask 130048   ;;  %vm1238_vm8 = vcmask 195584   ;;  %vm1454_vm9 = vcmask 523264  }
 0x23d   : > { %1797 = vmatprep.mubr.msk.bf16.mxu0 %vm2116_vm3, %v2115_v26  ;;  %1803 = vmatprep.mubr.msk.bf16.mxu1 %vm2116_vm3, %v2115_v26  ;;  %s2119_s24 = smov 80   ;;  %s2120_s19 = smov 88  }
 0x23e   : > { %s2121_s25 = smov 72   ;;  %s2122_s29 = smov 112  }
 0x23f   : > { %s2123_s2 = smov 104   ;;  %s2124_s23 = smov 56  }
 0x240   : > { %s2125_s26 = smov 64   ;;  %p1742_p0 = scmp.ge.s32.totalorder %s2095_s21, 1 }
 0x241   : > { %v1979_v25 = vld [vmem:[%s2598_s5] sm:$0xff]   ;;  %v1980_v27 = vld [vmem:[%s2598_s5 + $0x8] sm:$0xff]  }
 0x242   : > { %1794 = vmatpush3.bf16.msra.mxu0 %v1979_v25  ;;  %v2340_v28 = vld [vmem:[#allocation2] sm:$0xff] }
 0x243   : > { %1795 = vmatprep.subr.bf16.mxu0 %v2115_v26  ;;  %v709_v29 = vpack.c.bf16 %v2340_v28, %v2340_v28  ;;  %v1712_v30 = vld [vmem:[%s2599_s6] ss:$0 sm:$0xff] }
 0x246   : > { %1796 = vmatpush3.bf16.msra.mxu0 %v1980_v27 }
 0x247   : > { %1807 = vmatprep.subr.bf16.mxu0 %v2115_v26 }
 0x249   : > { %1798 = vmatmul.mubr.msk.bf16.vlgmr.msra.gmra.mrb[0].mxu0 %vm733_vm4, %v709_v29 }
 0x24a   : > { %1809 = vmatprep.mubr.msk.bf16.mxu0 %vm2116_vm3, %v2115_v26 }
 0x31c   : > { %v771_v31 = vpop.f32.mrb[0].mxu0 }
 0x31d   : > { %v772_v32 = vadd.f32 %v1712_v30, %v771_v31  ;;  %v1799_v33 = vpop.f32.mrb[1].mxu0 }
 0x31e   : > { %v774_v34 = vpop.f32.mrb[2].mxu0 }
 0x31f   : > { %v2354_v35 = vpack.c.bf16 %v772_v32, %v772_v32  ;;  %v1800_v36 = vpop.f32.mrb[3].mxu0 }
 0x321   : > { %890 = vrot.lane.b32.xlu1 %v2354_v35, %s2117_s28  ;;  %779 = vrot.lane.b32.xlu0 %v2354_v35, %s2118_s0  ;;  %s2126_s28 = smov 40   ;;  %s2127_s0 = smov 48  }
 0x325   : > { %1003 = vrot.lane.b32.xlu1 %v2354_v35, %s2119_s24  ;;  %892 = vrot.lane.b32.xlu0 %v2354_v35, %s2120_s19  ;;  %s2128_s24 = smov 8  }
 0x329   : > { %1114 = vrot.lane.b32.xlu1 %v2354_v35, %s2121_s25  ;;  %1001 = vrot.lane.b32.xlu0 %v2354_v35, %s2122_s29 }
 0x32d   : > { %1112 = vrot.lane.b32.xlu0 %v2354_v35, %s2123_s2 }
 0x393   : > { %v780_v37 = vpop.permute.xlu0 %779  ;;  %v891_v40 = vpop.permute.xlu1 %890 }
 0x394   : > { %v786_v38 = vsel %vm781_vm5, %v780_v37, 0 }
 0x395   : > { %1802 = vmatpush3.bf16.xpose.msra.mxu1 %v786_v38 }
 0x396   : > { %1813 = vmatprep.subr.bf16.mxu1 %v2115_v26 }
 0x397   : > { %v893_v39 = vpop.permute.xlu0 %892  ;;  %v1004_v42 = vpop.permute.xlu1 %1003 }
 0x398   : > { %v898_v41 = vsel %vm781_vm5, %v893_v39, 0  ;;  %v1009_v43 = vsel %vm781_vm5, %v1004_v42, 0 }
 0x39b   : > { %v1115_v44 = vpop.permute.xlu1 %1114  ;;  %v1002_v45 = vpop.permute.xlu0 %1001 }
 0x39c   : > { %1804 = vmatmul.mubr.msk.bf16.vlgmr.msra.gmra.mrb[0].mxu1 %vm781_vm5, %v2354_v35  ;;  %v1120_v46 = vsel %vm781_vm5, %v1115_v44, 0 }
 0x39d   : > { %1814 = vmatpush3.bf16.xpose.msra.mxu1 %v898_v41  ;;  %1815 = vmatprep.mubr.msk.bf16.mxu1 %vm2116_vm3, %v2115_v26 }
 0x39e   : > { %1825 = vmatprep.subr.bf16.mxu1 %v2115_v26 }
 0x39f   : > { %v1113_v47 = vpop.permute.xlu0 %1112 }
 0x3a4   : > { %1816 = vmatmul.mubr.msk.bf16.vlgmr.msra.gmra.mrb[4].mxu1 %vm781_vm5, %v891_v40 }
 0x3a5   : > { %1826 = vmatpush3.bf16.xpose.msra.mxu1 %v1009_v43  ;;  %1827 = vmatprep.mubr.msk.bf16.mxu1 %vm2116_vm3, %v2115_v26 }
 0x3a6   : > { %1837 = vmatprep.subr.bf16.mxu1 %v2115_v26 }
 0x3ac   : > { %1828 = vmatmul.mubr.msk.bf16.vlgmr.msra.gmra.mrb[8].mxu1 %vm781_vm5, %v1002_v45 }
 0x3ad   : > { %1838 = vmatpush3.bf16.xpose.msra.mxu1 %v1120_v46  ;;  %1839 = vmatprep.mubr.msk.bf16.mxu1 %vm2116_vm3, %v2115_v26 }
 0x3ae   : > { %1849 = vmatprep.subr.bf16.mxu1 %v2115_v26 }
 0x3b4   : > { %1840 = vmatmul.mubr.msk.bf16.vlgmr.msra.gmra.mrb[12].mxu1 %vm781_vm5, %v1113_v47 }
 0x3b5   : > { %1853 = vmatprep.mubr.msk.bf16.mxu1 %vm2116_vm3, %v2115_v26 }
 0x46f   : > { %v822_v48 = vpop.f32.mrb[0].mxu1 }
 0x470   : > { %v828_v49 = vmul.f32 0.35355338, %v822_v48  ;;  %v1805_v50 = vpop.f32.mrb[1].mxu1 }
 0x471   : > { %v825_v51 = vpop.f32.mrb[2].mxu1 }
 0x472   : > { %v1806_v52 = vpop.f32.mrb[3].mxu1  ;;  %v829_v53 = vsel %vm781_vm5, %v828_v49, -inf }
 0x473   : > { %830 = vmax.xlane.f32.xlu1 %v829_v53 }
 0x477   : > { %v934_v54 = vpop.f32.mrb[4].mxu1 }
 0x478   : > { %v940_v55 = vmul.f32 0.35355338, %v934_v54  ;;  %v1817_v56 = vpop.f32.mrb[5].mxu1  ;;  %v1981_v54 = vld [vmem:[%s2554_s7] sm:$0xff]  }
 0x479   : > { %v937_v57 = vpop.f32.mrb[6].mxu1  ;;  %1850 = vmatpush3.bf16.msra.mxu1 %v1981_v54  ;;  %v1982_v56 = vld [vmem:[%s2554_s7 + $0x8] sm:$0xff]  }
 0x47a   : > { %v1818_v58 = vpop.f32.mrb[7].mxu1  ;;  %v941_v59 = vsel %vm781_vm5, %v940_v55, -inf  ;;  %1851 = vmatprep.subr.bf16.mxu1 %v2115_v26 }
 0x47b   : > { %942 = vmax.xlane.f32.xlu0 %v941_v59 }
 0x47d   : > { %1852 = vmatpush3.bf16.msra.mxu1 %v1982_v56 }
 0x47e   : > { %1865 = vmatprep.subr.bf16.mxu1 %v2115_v26 }
 0x47f   : > { %v1045_v60 = vpop.f32.mrb[8].mxu1 }
 0x480   : > { %v1051_v61 = vmul.f32 0.35355338, %v1045_v60  ;;  %v1829_v62 = vpop.f32.mrb[9].mxu1 }
 0x481   : > { %v1048_v63 = vpop.f32.mrb[10].mxu1 }
 0x482   : > { %v1830_v0 = vpop.f32.mrb[11].mxu1  ;;  %v1052_v1 = vsel %vm781_vm5, %v1051_v61, -inf }
 0x483   : > { %1053 = vmax.xlane.f32.xlu0 %v1052_v1 }
 0x484   : > { %952 = vrot.lane.b32.xlu1 %v2354_v35, %s2124_s23  ;;  %s2129_s23 = smov 16  }
 0x487   : > { %v1156_v2 = vpop.f32.mrb[12].mxu1 }
 0x488   : > { %v1841_v3 = vpop.f32.mrb[13].mxu1  ;;  %v1162_v6 = vmul.f32 0.35355338, %v1156_v2 }
 0x489   : > { %v1159_v4 = vpop.f32.mrb[14].mxu1 }
 0x48a   : > { %v1842_v5 = vpop.f32.mrb[15].mxu1  ;;  %v1163_v7 = vsel %vm781_vm5, %v1162_v6, -inf }
 0x499   : > { %840 = vrot.lane.b32.xlu0 %v2354_v35, %s2125_s26  ;;  %s2130_s26 = smov 24  }
 0x49d   : > { %1174 = vrot.lane.b32.xlu0 %v2354_v35, %s2126_s28 }
 0x4a8   : > { %1164 = vmax.xlane.f32.xlu1 %v1163_v7 }
 0x4b9   : > { %1063 = vrot.lane.b32.xlu1 %v2354_v35, %s2127_s0 }
 0x500   : > { %v831_v8 = vpop.xlane.xlu1 %830 }
 0x501   : > { %v832_v9 = vsub.f32 %v828_v49, %v831_v8 }
 0x503   : > { %v833_v10 = vmul.f32 1.442695, %v832_v9 }
 0x504   : > { %v953_v20 = vpop.permute.xlu1 %952 }
 0x505   : > { %1989 = vpow2.f32 %v833_v10  ;;  %v958_v24 = vsel %vm845_vm6, %v953_v20, 0 }
 0x508   : > { %v943_v11 = vpop.xlane.xlu0 %942 }
 0x509   : > { %v944_v12 = vsub.f32 %v940_v55, %v943_v11 }
 0x50b   : > { %v945_v13 = vmul.f32 1.442695, %v944_v12 }
 0x50d   : > { %1991 = vpow2.f32 %v945_v13 }
 0x50f   : > { %v1990_v17 = vpop.eup %1989 }
 0x510   : > { %v1054_v14 = vpop.xlane.xlu0 %1053  ;;  %v839_v22 = vpack.c.bf16 %v1990_v17, %v1990_v17  ;;  %v835_v25 = vsel %vm781_vm5, %v1990_v17, 0.0 }
 0x511   : > { %v1055_v15 = vsub.f32 %v1051_v61, %v1054_v14 }
 0x513   : > { %v1056_v16 = vmul.f32 1.442695, %v1055_v15  ;;  %v1724_v15 = vld [vmem:[%s2555_s8] ss:$0 sm:$0xff] }
 0x514   : > { %v841_v18 = vpop.permute.xlu0 %840 }
 0x515   : > { %1993 = vpow2.f32 %v1056_v16  ;;  %v847_v19 = vsel %vm845_vm6, %v841_v18, 0 }
 0x516   : > { %1808 = vmatpush3.bf16.msra.mxu0 %v847_v19 }
 0x517   : > { %v1992_v21 = vpop.eup %1991  ;;  %1819 = vmatprep.subr.bf16.mxu0 %v2115_v26 }
 0x518   : > { %v947_v23 = vsel %vm781_vm5, %v1992_v21, 0.0  ;;  %v951_v29 = vpack.c.bf16 %v1992_v21, %v1992_v21  ;;  %v1175_v36 = vpop.permute.xlu0 %1174 }
 0x519   : > { %948 = vadd.xlane.f32.xlu1 %v947_v23  ;;  %1810 = vmatmul.mubr.msk.bf16.vlgmr.msra.gmra.mrb[4].mxu0 %vm781_vm5, %v839_v22  ;;  %v1180_v38 = vsel %vm845_vm6, %v1175_v36, 0 }
 0x51a   : > { %1820 = vmatpush3.bf16.msra.mxu0 %v958_v24  ;;  %1821 = vmatprep.mubr.msk.bf16.mxu0 %vm2116_vm3, %v2115_v26 }
 0x51b   : > { %1831 = vmatprep.subr.bf16.mxu0 %v2115_v26 }
 0x51d   : > { %836 = vadd.xlane.f32.xlu1 %v835_v25 }
 0x51f   : > { %v1994_v27 = vpop.eup %1993 }
 0x520   : > { %v1058_v30 = vsel %vm781_vm5, %v1994_v27, 0.0  ;;  %v1062_v37 = vpack.c.bf16 %v1994_v27, %v1994_v27 }
 0x521   : > { %1059 = vadd.xlane.f32.xlu0 %v1058_v30  ;;  %1822 = vmatmul.mubr.msk.bf16.vlgmr.msra.gmra.mrb[8].mxu0 %vm781_vm5, %v951_v29  ;;  %v1983_v30 = vld [vmem:[%s2558_s11] sm:$0xff]  }
 0x522   : > { %1833 = vmatprep.mubr.msk.bf16.mxu0 %vm2116_vm3, %v2115_v26 }
 0x535   : > { %v1165_v31 = vpop.xlane.xlu1 %1164 }
 0x536   : > { %v1166_v32 = vsub.f32 %v1162_v6, %v1165_v31 }
 0x538   : > { %v1167_v33 = vmul.f32 1.442695, %v1166_v32 }
 0x539   : > { %v1064_v34 = vpop.permute.xlu1 %1063 }
 0x53a   : > { %1995 = vpow2.f32 %v1167_v33  ;;  %v1069_v35 = vsel %vm845_vm6, %v1064_v34, 0 }
 0x53b   : > { %1832 = vmatpush3.bf16.msra.mxu0 %v1069_v35  ;;  %v1728_v35 = vld [vmem:[%s2556_s9] ss:$0 sm:$0xff] }
 0x53c   : > { %1843 = vmatprep.subr.bf16.mxu0 %v2115_v26 }
 0x53e   : > { %1834 = vmatmul.mubr.msk.bf16.vlgmr.msra.gmra.mrb[12].mxu0 %vm781_vm5, %v1062_v37  ;;  %v1729_v37 = vld [vmem:[%s2557_s10] ss:$0 sm:$0xff] }
 0x53f   : > { %1844 = vmatpush3.bf16.msra.mxu0 %v1180_v38  ;;  %1845 = vmatprep.mubr.msk.bf16.mxu0 %vm2116_vm3, %v2115_v26 }
 0x540   : > { %1857 = vmatprep.subr.bf16.mxu0 %v2115_v26 }
 0x544   : > { %v1996_v39 = vpop.eup %1995 }
 0x545   : > { %v1169_v40 = vsel %vm781_vm5, %v1996_v39, 0.0  ;;  %v1173_v41 = vpack.c.bf16 %v1996_v39, %v1996_v39 }
 0x546   : > { %1170 = vadd.xlane.f32.xlu0 %v1169_v40 }
 0x547   : > { %1846 = vmatmul.mubr.msk.bf16.vlgmr.msra.gmra.mrb[16].mxu0 %vm781_vm5, %v1173_v41  ;;  %v1985_v41 = vld [vmem:[%s2560_s13] sm:$0xff]  }
 0x548   : > { %1861 = vmatprep.mubr.msk.bf16.mxu0 %vm2116_vm3, %v2115_v26  ;;  %1858 = vmatpush3.bf16.msra.mxu0 %v1983_v30 }
 0x549   : > { %1859 = vmatprep.subr.bf16.mxu0 %v2115_v26 }
 0x5a6   : > { %v949_v42 = vpop.xlane.xlu1 %948 }
 0x5a7   : > { %1997 = vrcp.f32 %v949_v42  ;;  %v1986_v42 = vld [vmem:[%s2560_s13 + $0x8] sm:$0xff]  }
 0x5aa   : > { %v837_v5 = vpop.xlane.xlu1 %836 }
 0x5ae   : > { %v1060_v53 = vpop.xlane.xlu0 %1059 }
 0x5af   : > { %1999 = vrcp.f32 %v1060_v53 }
 0x5b1   : > { %v1998_v47 = vpop.eup %1997 }
 0x5b9   : > { %v2000_v57 = vpop.eup %1999 }
 0x5d3   : > { %v1171_v55 = vpop.xlane.xlu0 %1170 }
 0x5d4   : > { %2001 = vrcp.f32 %v1171_v55 }
 0x5d5   : > { %2003 = vrcp.f32 %v837_v5 }
 0x5de   : > { %v2002_v63 = vpop.eup %2001 }
 0x5df   : > { %v2004_v6 = vpop.eup %2003 }
 0x5ec   : > { %v883_v43 = vpop.f32.mrb[4].mxu0 }
 0x5ed   : > { %v1811_v44 = vpop.f32.mrb[5].mxu0  ;;  %v889_v9 = vmul.f32 %v2004_v6, %v883_v43  ;;  %v1987_v43 = vld [vmem:[%s2560_s13 + $0x10] sm:$0xff]  }
 0x5ee   : > { %v886_v45 = vpop.f32.mrb[6].mxu0  ;;  %v1988_v44 = vld [vmem:[%s2560_s13 + $0x18] sm:$0xff]  }
 0x5ef   : > { %v1812_v46 = vpop.f32.mrb[7].mxu0  ;;  %v1730_v45 = vld [vmem:[%s2559_s12] ss:$0 sm:$0xff] }
 0x5f4   : > { %v994_v48 = vpop.f32.mrb[8].mxu0 }
 0x5f5   : > { %v1000_v49 = vmul.f32 %v1998_v47, %v994_v48  ;;  %v1823_v50 = vpop.f32.mrb[9].mxu0 }
 0x5f6   : > { %v997_v51 = vpop.f32.mrb[10].mxu0 }
 0x5f7   : > { %1224 = vrot.lane.b32.xlu0 %v1000_v49, %s2128_s24  ;;  %v1824_v52 = vpop.f32.mrb[11].mxu0 }
 0x611   : > { %v1105_v58 = vpop.f32.mrb[12].mxu0 }
 0x612   : > { %v1111_v59 = vmul.f32 %v2000_v57, %v1105_v58  ;;  %v1835_v60 = vpop.f32.mrb[13].mxu0 }
 0x613   : > { %v1108_v61 = vpop.f32.mrb[14].mxu0  ;;  %v1734_v60 = vld [vmem:[%s2561_s14] ss:$0 sm:$0xff] }
 0x614   : > { %1228 = vrot.lane.b32.xlu1 %v1111_v59, %s2129_s23  ;;  %v1836_v62 = vpop.f32.mrb[15].mxu0 }
 0x61a   : > { %v1216_v0 = vpop.f32.mrb[16].mxu0 }
 0x61b   : > { %v1222_v1 = vmul.f32 %v2002_v63, %v1216_v0  ;;  %v1847_v2 = vpop.f32.mrb[17].mxu0 }
 0x61c   : > { %v1219_v3 = vpop.f32.mrb[18].mxu0 }
 0x61d   : > { %1232 = vrot.lane.b32.xlu1 %v1222_v1, %s2130_s26  ;;  %v1848_v4 = vpop.f32.mrb[19].mxu0 }
 0x669   : > { %v1225_v7 = vpop.permute.xlu0 %1224 }
 0x66a   : > { %v1235_v10 = vsel %vm781_vm5, %v889_v9, %v1225_v7 }
 0x686   : > { %v1229_v8 = vpop.permute.xlu1 %1228 }
 0x687   : > { %v1237_v11 = vsel %vm1236_vm7, %v1235_v10, %v1229_v8 }
 0x68f   : > { %v1233_v12 = vpop.permute.xlu1 %1232 }
 0x690   : > { %v1239_v13 = vsel %vm1238_vm8, %v1237_v11, %v1233_v12 }
 0x691   : > { %v1240_v14 = vpack.c.bf16 %v1239_v13, %v1239_v13  ;;  %v1740_v13 = vld [vmem:[%s2562_s15] ss:$0 sm:$0xff] }
 0x693   : > { %1854 = vmatmul.mubr.msk.bf16.vlgmr.msra.gmra.mrb[16].mxu1 %vm733_vm4, %v1240_v14 }
 0x694   : > { %1873 = vmatprep.mubr.msk.bf16.mxu1 %vm2116_vm3, %v2115_v26  ;;  %1866 = vmatpush3.bf16.msra.mxu1 %v1985_v41 }
 0x695   : > { %1867 = vmatprep.subr.bf16.mxu1 %v2115_v26 }
 0x698   : > { %1868 = vmatpush3.bf16.msra.mxu1 %v1986_v42 }
 0x699   : > { %1869 = vmatprep.subr.bf16.mxu1 %v2115_v26 }
 0x69c   : > { %1870 = vmatpush3.bf16.msra.mxu1 %v1987_v43 }
 0x69d   : > { %1871 = vmatprep.subr.bf16.mxu1 %v2115_v26 }
 0x6a0   : > { %1872 = vmatpush3.bf16.msra.mxu1 %v1988_v44 }
 0x766   : > { %v1301_v16 = vpop.f32.mrb[16].mxu1 }
 0x767   : > { %v1302_v17 = vadd.f32 %v1724_v15, %v1301_v16  ;;  %v1855_v18 = vpop.f32.mrb[17].mxu1  ;;  %v1741_v15 = vld [vmem:[%s2563_s16] ss:$0 sm:$0xff] }
 0x768   : > { %v1304_v19 = vpop.f32.mrb[18].mxu1 }
 0x769   : > { %v1856_v20 = vpop.f32.mrb[19].mxu1  ;;  %v1307_v21 = vadd.f32 %v1302_v17, %v2340_v28  ;;  %v1984_v28 = vld [vmem:[%s2558_s11 + $0x8] sm:$0xff]  }
 0x76a   : > { %1860 = vmatpush3.bf16.msra.mxu0 %v1984_v28 }
 0x76b   : > { %v1310_v22 = vsel %vm733_vm4, %v1307_v21, 0.0 }
 0x76c   : > { %1311 = vadd.xlane.f32.xlu0 %v1310_v22 }
 0x7f9   : > { %v1312_v23 = vpop.xlane.xlu0 %1311 }
 0x7fa   : > { %v1314_v24 = vmul.f32 0.03125, %v1312_v23 }
 0x7fc   : > { %v1315_v25 = vsub.f32 %v1307_v21, %v1314_v24 }
 0x7fe   : > { %v1316_v27 = vmul.f32 %v1315_v25, %v1315_v25 }
 0x800   : > { %v1317_v29 = vsel %vm733_vm4, %v1316_v27, 0.0 }
 0x801   : > { %1318 = vadd.xlane.f32.xlu1 %v1317_v29 }
 0x88e   : > { %v1319_v31 = vpop.xlane.xlu1 %1318 }
 0x88f   : > { %v1320_v32 = vmul.f32 0.03125, %v1319_v31 }
 0x891   : > { %v1321_v33 = vadd.f32 1e-12, %v1320_v32 }
 0x893   : > { %2005 = vrsqrt.f32 %v1321_v33 }
 0x89d   : > { %v2006_v34 = vpop.eup %2005 }
 0x89e   : > { %v1323_v36 = vmul.f32 %v2006_v34, %v1315_v25 }
 0x8a0   : > { %v1330_v38 = vmul.f32 %v1728_v35, %v1323_v36 }
 0x8a2   : > { %v1337_v39 = vadd.f32 %v1729_v37, %v1330_v38 }
 0x8a4   : > { %v1338_v40 = vpack.c.bf16 %v1337_v39, %v1337_v39 }
 0x8a6   : > { %1862 = vmatmul.mubr.msk.bf16.vlgmr.msra.gmra.mrb[20].mxu0 %vm733_vm4, %v1338_v40 }
 0x979   : > { %v1399_v46 = vpop.f32.mrb[20].mxu0 }
 0x97a   : > { %v1400_v47 = vadd.f32 %v1730_v45, %v1399_v46  ;;  %v1863_v48 = vpop.f32.mrb[21].mxu0 }
 0x97b   : > { %v1402_v49 = vpop.f32.mrb[22].mxu0 }
 0x97c   : > { %v1406_v50 = vmul.f32 0.044715, %v1400_v47  ;;  %v1864_v51 = vpop.f32.mrb[23].mxu0  ;;  %v1405_v57 = vmul.f32 0.5, %v1400_v47 }
 0x97e   : > { %v1407_v52 = vmul.f32 %v1406_v50, %v1400_v47 }
 0x980   : > { %v1408_v53 = vmul.f32 %v1407_v52, %v1400_v47 }
 0x982   : > { %v1409_v54 = vadd.f32 %v1408_v53, %v1400_v47 }
 0x984   : > { %v1410_v55 = vmul.f32 0.7978846, %v1409_v54 }
 0x986   : > { %2007 = vtanh.f32 %v1410_v55 }
 0x990   : > { %v2008_v56 = vpop.eup %2007 }
 0x991   : > { %v1412_v58 = vadd.f32 1.0, %v2008_v56 }
 0x993   : > { %v1413_v26 = vmul.f32 %v1412_v58, %v1405_v57 }
 0x995   : > { %v1414_v59 = vpack.c.bf16 %v1413_v26, %v1413_v26 }
 0x997   : > { %1874 = vmatmul.mubr.msk.bf16.vlgmr.msra.gmra.mrb[20].mxu1 %vm1454_vm9, %v1414_v59 }
 0xa6a   : > { %v1492_v61 = vpop.f32.mrb[20].mxu1 }
 0xa6b   : > { %v1493_v62 = vadd.f32 %v1734_v60, %v1492_v61  ;;  %v1875_v63 = vpop.f32.mrb[21].mxu1 }
 0xa6c   : > { %v1495_v0 = vpop.f32.mrb[22].mxu1 }
 0xa6d   : > { %v1876_v1 = vpop.f32.mrb[23].mxu1  ;;  %v1498_v2 = vadd.f32 %v1493_v62, %v1337_v39 }
 0xa6f   : > { %v1501_v3 = vsel %vm733_vm4, %v1498_v2, 0.0 }
 0xa70   : > { %1502 = vadd.xlane.f32.xlu0 %v1501_v3 }
 0xafd   : > { %v1503_v4 = vpop.xlane.xlu0 %1502 }
 0xafe   : > { %v1504_v5 = vmul.f32 0.03125, %v1503_v4 }
 0xb00   : > { %v1505_v6 = vsub.f32 %v1498_v2, %v1504_v5 }
 0xb02   : > { %v1506_v7 = vmul.f32 %v1505_v6, %v1505_v6 }
 0xb04   : > { %v1507_v8 = vsel %vm733_vm4, %v1506_v7, 0.0 }
 0xb05   : > { %1508 = vadd.xlane.f32.xlu0 %v1507_v8 }
 0xb92   : > { %v1509_v9 = vpop.xlane.xlu0 %1508 }
 0xb93   : > { %v1510_v10 = vmul.f32 0.03125, %v1509_v9 }
 0xb95   : > { %v1511_v11 = vadd.f32 1e-12, %v1510_v10 }
 0xb97   : > { %2009 = vrsqrt.f32 %v1511_v11 }
 0xba0   : > { %1531 = sbr.rel (%p1742_p0) target bundleno = 2985 (0xba9), region = 104 }
 0xba1   : > { %v2010_v12 = vpop.eup %2009 }
 0xba2   : > { %v1513_v14 = vmul.f32 %v2010_v12, %v1505_v6 }
 0xba4   : > { %v1520_v16 = vmul.f32 %v1740_v13, %v1513_v14 }
 0xba6   : > { %v1527_v17 = vadd.f32 %v1741_v15, %v1520_v16 }
 0xba8   : > { %1532 = vst.msk [vmem:[#allocation2] sm:$0xff] %vm733_vm4, %v1527_v17 }
 0xba9 PF: > { %p1743_p1 = scmp.ne.s32.totalorder %s2095_s21, 1 }
 0xbaa   : > { %v2011_v18 = vld [vmem:[%s2564_s17] sm:$0xff] (!%p1743_p1)   ;;  %v2131_v19 = vmov (!%p1743_p1), 0.0   ;;  %v2012_v20 = vld [vmem:[%s2564_s17 + $0x8] sm:$0xff] (!%p1743_p1)   ;;  %vm2132_vm10 = vmmov (!%p1743_p1), 0   ;;  %v1537_v21 = vpack.c.bf16 (!%p1743_p1), %v1527_v17, %v1527_v17  ;;  %s2600_s25 = scalar_lea.vmem (!%p1743_p1), [#allocation3], %s2307_s22 }
 0xbab   : > { %1536 = sbr.rel (%p1743_p1) target bundleno = 3524 (0xdc4), region = 108  ;;  %1877 = vmatprep.subr.bf16.mxu0 (!%p1743_p1), %v2131_v19  ;;  %1881 = vmatprep.mubr.msk.bf16.mxu0 (!%p1743_p1), %vm2132_vm10, %v2131_v19  ;;  %v1744_v22 = vld [vmem:[%s2565_s18] ss:$0 sm:$0xff] (!%p1743_p1) }
 0xbac   : > { %1878 = vmatpush3.bf16.msra.mxu0 (!%p1743_p1), %v2011_v18 }
 0xbad   : > { %1879 = vmatprep.subr.bf16.mxu0 (!%p1743_p1), %v2131_v19 }
 0xbb0   : > { %1880 = vmatpush3.bf16.msra.mxu0 (!%p1743_p1), %v2012_v20 }
 0xbb3   : > { %1882 = vmatmul.mubr.msk.bf16.vlgmr.msra.gmra.mrb[0].mxu0 %vm733_vm4, %v1537_v21 }
 0xc86   : > { %v1598_v23 = vpop.f32.mrb[0].mxu0 }
 0xc87   : > { %v1599_v24 = vadd.f32 %v1744_v22, %v1598_v23  ;;  %v1883_v25 = vpop.f32.mrb[1].mxu0 }
 0xc88   : > { %v1601_v27 = vpop.f32.mrb[2].mxu0 }
 0xc89   : > { %1604 = vmax.xlane.f32.xlu0 %v1599_v24  ;;  %v1884_v29 = vpop.f32.mrb[3].mxu0 }
 0xd16   : > { %v1605_v30 = vpop.xlane.xlu0 %1604 }
 0xd17   : > { %v1606_v28 = vsub.f32 %v1599_v24, %v1605_v30 }
 0xd19   : > { %v1607_v31 = vmul.f32 1.442695, %v1606_v28 }
 0xd1b   : > { %2013 = vpow2.f32 %v1607_v31 }
 0xd25   : > { %v2014_v32 = vpop.eup %2013 }
 0xd26   : > { %1609 = vadd.xlane.f32.xlu0 %v2014_v32 }
 0xdb3   : > { %v1610_v33 = vpop.xlane.xlu0 %1609 }
 0xdb4   : > { %2015 = vlog2.f32 %v1610_v33 }
 0xdbe   : > { %v2016_v34 = vpop.eup %2015 }
 0xdbf   : > { %v1612_v35 = vmul.f32 0.6931472, %v2016_v34 }
 0xdc1   : > { %v1613_v36 = vsub.f32 %v1606_v28, %v1612_v35 }
 0xdc3   : > { %1614 = vst [vmem:[%s2600_s25] sm:$0xff] %v1613_v36 }
 0xdc4 PF: > { %s1749_s29 = sshll.u32 %s2099_s1, 7  ;;  %s2601_s26 = sld [smem:[#allocation20_spill]] }
 0xdc5   : > { %s2602_s0 = scalar_lea.vmem [#allocation3], %s2307_s22  ;;  %s2603_s21 = sand.u32 1, %s2087_s30  }
 0xdc6   : > { %s1629_s24 = sshll.u32 %s2602_s0, 4  ;;  %s1616_s19 = scalar_lea.sflag [#allocation4], %s2603_s21  ;;  %s1630_s24 = int_to_ptr.vmem [resolvable:$true] %s1629_s24 }
 0xdc7   : > { %s2017_s4 = scalar_lea.vmem %s1630_s24, 128  ;;  %s2133_s25 = smov [#allocation3]  }
 0xdc8   : > { %p2018_p2 = scmp.ne.s32.totalorder %s1630_s24, %s2017_s4  ;;  %s2021_s5 = sshll.u32 %s2133_s25, 4  ;;  %s2022_s5 = int_to_ptr.vmem [resolvable:$false] %s2021_s5 }
 0xdc9   : > { %s2023_s6 = scalar_lea.vmem %s2022_s5, 256  ;;  %p2024_p6 = scmp.lt.s32.totalorder %s1630_s24, %s2022_s5 }
 0xdca   : > { %s2496_s28 = scalar_lea.hbm %s2601_s26, %s1749_s29  ;;  %p2019_p4 = pnand %p2018_p2, %p2283_p3 }
 0xdcb   : > { %p2025_p7 = scmp.lt.s32.totalorder %s2023_s6, %s2017_s4 }
 0xdcc   : > { %p2020_p5 = pneg %p2019_p4 }
 0xdcd   : > { %p2026_p8 = por %p2025_p7, %p2024_p6 }
 0xdcf   : > { %p2027_p10 = pnand %p2026_p8, %p2020_p5 }
 0xdd1   : > { %2030 = shalt.err (!%p2027_p10)
}
 0xdd2   : > { %s2031_s1 = scalar_lea.hbm %s2496_s28, 128  ;;  %s2035_s2 = scalar_lea.hbm %s2601_s26, 256 }
 0xdd3   : > { %p2032_p11 = scmp.ne.s32.totalorder %s2496_s28, %s2031_s1  ;;  %p2036_p0 = scmp.lt.u32.totalorder %s2496_s28, %s2601_s26 }
 0xdd4   : > { %p2037_p1 = scmp.lt.u32.totalorder %s2035_s2, %s2031_s1  ;;  %p2039_p4 = scmp.lt.u32.totalorder %s2031_s1, %s2496_s28 }
 0xdd5   : > { %p2033_p12 = pnand %p2032_p11, %p2283_p3 }
 0xdd6   : > { %p2038_p2 = por %p2037_p1, %p2036_p0 }
 0xdd7   : > { %p2034_p13 = pneg %p2033_p12 }
 0xdd8   : > { %p2040_p5 = por %p2039_p4, %p2038_p2 }
 0xdda   : > { %p2041_p6 = pnand %p2040_p5, %p2034_p13 }
 0xddc   : > { %2044 = shalt.err (!%p2041_p6)
}
 0xddd   : > { %1885 = dma.vmem_to_hbm [thread:$0]  (%p2283_p3), %s1630_s24, 128, %s2496_s28, %s1616_s19  }
 0xdde PF: > { %s2604_s4 = sld [smem:[#allocation9_spill]]  ;;  %s2605_s6 = sld [smem:[#allocation6_spill]] }
 0xde4   : > { %p1891_p7 = scmp.ge.s32.totalorder %s2604_s4, 2  ;;  %s1641_s21 = sand.u32 1, %s2605_s6  }
 0xde5   : > { %s1642_s25 = scalar_lea.sflag [#allocation4], %s1641_s21 }
 0xde6   : > { %p1888_p8 = pnand %p1891_p7, %p2293_p9 }
 0xde8   : > { %2078 = dma.done.wait (!%p1888_p8), %s1642_s25, 128  }
 0xde9   : > { %2080 = vsyncadd (!%p1888_p8), %s1642_s25, 4294967168  ;;  %s32_s23 = sadd.s32 1, %s2604_s4   ;;  %s2607_s21 = sld [smem:[#allocation7_spill]] }
 0xdea   : > { %p29_p10 = scmp.ge.s32.totalorder %s32_s23, 6   ;;  %s2608_s1 = sld [smem:[#allocation8_spill]] }
 0xdeb   : > { %s2609_s22 = sld [smem:[#allocation10_spill]]  ;;  %s2610_s2 = sld [smem:[#allocation11_spill]] }
 0xdec   : > { %s2611_s0 = smov %s2087_s30  ;;  %s2612_s30 = smov %s2091_s20 }
 0xded   : > { %s2613_s20 = smov %s2301_s3  ;;  %31 = sbr.rel (!%p29_p10) target bundleno = 14 (0xe), region = 143 }
 0xdf4   :  { %1647 = vsyncpa [#allocation4], 1 }
 0xdf5   :  { %1649 = vsyncpa [#allocation4 + $0x1], 1 }

</bundles_post_ra>
